<compile_context>
chip_gen: v7x
topology: tpu7x:2x2x1
jax: 0.10.0
libtpu: 0.0.40
codegen_flags: <defaults>
</compile_context>

<pallas_src>
import functools

import jax
import jax.numpy as jnp
from jax.experimental import pallas as pl
from jax.experimental.pallas import tpu as pltpu


def _round_up(v, m):
    return (v + m - 1) // m * m


_Z_SAT = 1e4  # 0.5*tanh(0.5*1e4)+0.5 == 1.0 exactly in f32 -> identity GRU step


def _gru_chunk_kernel(gi_ref, whh_ref, h_ref, *, chunk, bp, hp, hid, unroll):
    """One time-chunk of the GRU recurrence.

    gi_ref : (chunk, Bp, 3*Hp) f32   precomputed input projections (+ biases)
    whh_ref: (Hp, 3*Hp)              W_hh^T, gate layout [r|z|n]; row `hid` of
                                     the n block holds b_hh_n (bias fold)
    h_ref  : (Bp, Hp) f32            hidden state; resident output block that
                                     doubles as the carry across chunks
    """
    @pl.when(pl.program_id(0) == 0)
    def _():
        lane = jax.lax.broadcasted_iota(jnp.int32, (bp, hp), 1)
        # Lane `hid` carries a constant 1.0 so h @ W_hh^T picks up b_hh_n.
        h_ref[...] = jnp.where(lane == hid, 1.0, 0.0).astype(jnp.float32)

    w = whh_ref[...]  # hoisted: loaded once per chunk

    def sig(v):  # single EUP op instead of exp + divide
        return 0.5 * jnp.tanh(0.5 * v) + 0.5

    def step(t, h):
        gi = gi_ref[t]                                     # (Bp, 3*Hp)
        gh = jnp.dot(h.astype(w.dtype), w,
                     preferred_element_type=jnp.float32)   # (Bp, 3*Hp)
        r = sig(gi[:, 0:hp] + gh[:, 0:hp])
        z = sig(gi[:, hp:2 * hp] + gh[:, hp:2 * hp])
        n = jnp.tanh(gi[:, 2 * hp:3 * hp] + r * gh[:, 2 * hp:3 * hp])
        return (1.0 - z) * n + z * h

    h_ref[...] = jax.lax.fori_loop(0, chunk, step, h_ref[...], unroll=unroll)


def encoder_rnn_forward(x, w_ih, w_hh, b_ih, b_hh, *,
                        matmul_dtype=jnp.bfloat16, time_chunk=256, unroll=8):
    """x: (B, T, D). Weights in torch.nn.GRUCell layout:
    w_ih (3H, D), w_hh (3H, H), b_ih (3H,), b_hh (3H,). Returns (B, H) float32."""
    B, T, D = x.shape
    H = w_hh.shape[1]
    f32 = jnp.float32

    Bp = _round_up(max(B, 8), 8)
    Hp = _round_up(max(H + 1, 128), 128)   # lane H is the constant-1 bias column
    Gp = 3 * Hp

    Tc = int(min(time_chunk, T))
    n_chunks = pl.cdiv(T, Tc)
    Tpad = n_chunks * Tc
    unroll = int(min(unroll, Tc))

    x = x.astype(f32)
    w_ih = w_ih.astype(f32)
    w_hh = w_hh.astype(f32)
    b_ih = b_ih.astype(f32)
    b_hh = b_hh.astype(f32)

    # ---- input projection for ALL timesteps (plain XLA, off the serial path) ----
    gi_raw = jnp.einsum('btd,gd->tbg', x, w_ih).reshape(T, B, 3, H)

    # Per-gate bias padded to Hp lanes.  b_hh for r/z gates folds in here;
    # b_hh_n must stay inside r*(...) -> folded into W_hh^T row `H` instead.
    bias = jnp.zeros((3, Hp), f32)
    bias = bias.at[0, :H].set(b_ih[0:H] + b_hh[0:H])
    bias = bias.at[1, :H].set(b_ih[H:2 * H] + b_hh[H:2 * H])
    bias = bias.at[2, :H].set(b_ih[2 * H:3 * H])
    bias = bias.at[1, H].set(_Z_SAT)   # z==1 at lane H -> constant-1 column survives

    gi = jnp.zeros((Tpad, Bp, 3, Hp), f32)
    gi = gi.at[:T, :B, :, :H].set(gi_raw)
    gi = gi + bias[None, None]
    gi = gi.at[T:, :, 1, :].set(_Z_SAT)   # padded timesteps: z==1 -> identity step
    gi = gi.reshape(Tpad, Bp, Gp)

    # ---- W_hh^T padded to (Hp, 3*Hp); b_hh_n folded into row H of the n block ----
    whh_g = w_hh.reshape(3, H, H)                          # (gate, out_j, in_k)
    whh_t = jnp.zeros((Hp, 3, Hp), f32)                    # (in_k, gate, out_j)
    whh_t = whh_t.at[:H, :, :H].set(jnp.transpose(whh_g, (2, 0, 1)))
    whh_t = whh_t.at[H, 2, :H].set(b_hh[2 * H:3 * H])
    whh_t = whh_t.reshape(Hp, Gp).astype(matmul_dtype)

    kernel = functools.partial(_gru_chunk_kernel, chunk=Tc, bp=Bp, hp=Hp,
                               hid=H, unroll=unroll)

    # Explicit VMEM budget: double-buffered gi chunk + weights + hidden state.
    bytes_gi = 2 * Tc * Bp * Gp * 4
    bytes_w = 2 * Hp * Gp * jnp.dtype(matmul_dtype).itemsize
    bytes_h = 2 * Bp * Hp * 4
    vmem_limit = int(min(max(bytes_gi + bytes_w + bytes_h + (4 << 20), 16 << 20),
                         64 << 20))

    h_pad = pl.pallas_call(
        kernel,
        out_shape=jax.ShapeDtypeStruct((Bp, Hp), f32),
        grid=(n_chunks,),
        in_specs=[
            pl.BlockSpec((Tc, Bp, Gp), lambda c: (c, 0, 0)),
            pl.BlockSpec((Hp, Gp), lambda c: (0, 0)),
        ],
        out_specs=pl.BlockSpec((Bp, Hp), lambda c: (0, 0)),
        compiler_params=pltpu.CompilerParams(
            dimension_semantics=("arbitrary",),
            vmem_limit_bytes=vmem_limit),
    )(gi, whh_t)

    return h_pad[:B, :H]


def _reference_forward(x, w_ih, w_hh, b_ih, b_hh):
    """Pure-JAX reference matching torch.nn.GRUCell semantics."""
    B, T, D = x.shape
    H = w_hh.shape[1]
    h = jnp.zeros((B, H), jnp.float32)

    def step(h, xt):
        gi = xt @ w_ih.T + b_ih
        gh = h @ w_hh.T + b_hh
        i_r, i_z, i_n = jnp.split(gi, 3, axis=1)
        h_r, h_z, h_n = jnp.split(gh, 3, axis=1)
        r = jax.nn.sigmoid(i_r + h_r)
        z = jax.nn.sigmoid(i_z + h_z)
        n = jnp.tanh(i_n + r * h_n)
        return (1.0 - z) * n + z * h, None

    h, _ = jax.lax.scan(step, h, jnp.transpose(x, (1, 0, 2)))
    return h


if __name__ == "__main__":
    # Shapes consistent with EncoderRNN.forward: (batch, seq, input_size)
    B, T, D, H = 2, 8, 4, 32

    key = jax.random.PRNGKey(0)
    k_x, k1, k2, k3, k4 = jax.random.split(key, 5)

    # Same init distribution as torch.nn.GRUCell: U(-1/sqrt(H), 1/sqrt(H))
    bound = 1.0 / jnp.sqrt(jnp.float32(H))
    w_ih = jax.random.uniform(k1, (3 * H, D), jnp.float32, -bound, bound)
    w_hh = jax.random.uniform(k2, (3 * H, H), jnp.float32, -bound, bound)
    b_ih = jax.random.uniform(k3, (3 * H,), jnp.float32, -bound, bound)
    b_hh = jax.random.uniform(k4, (3 * H,), jnp.float32, -bound, bound)

    x = jax.random.normal(k_x, (B, T, D), jnp.float32)

    ref = jax.block_until_ready(_reference_forward(x, w_ih, w_hh, b_ih, b_hh))

    # 1) f32 matmul path, single time chunk: strict tolerance.
    out_f32 = jax.block_until_ready(
        encoder_rnn_forward(x, w_ih, w_hh, b_ih, b_hh, matmul_dtype=jnp.float32))
    if not jnp.allclose(out_f32, ref, atol=1e-4, rtol=1e-4):
        raise AssertionError("Pallas GRU encoder (f32) mismatch vs reference")

    # 2) f32 path, multi-chunk grid with padded identity timesteps (T=8, chunk=3).
    out_chk = jax.block_until_ready(
        encoder_rnn_forward(x, w_ih, w_hh, b_ih, b_hh,
                            matmul_dtype=jnp.float32, time_chunk=3, unroll=2))
    if not jnp.allclose(out_chk, ref, atol=1e-4, rtol=1e-4):
        raise AssertionError("Pallas GRU encoder (chunked f32) mismatch vs reference")

    # 3) default bf16-matmul path: loose tolerance (recurrent matmul inputs in bf16).
    out_bf16 = jax.block_until_ready(
        encoder_rnn_forward(x, w_ih, w_hh, b_ih, b_hh))
    if not jnp.allclose(out_bf16, ref, atol=5e-2, rtol=5e-2):
        raise AssertionError("Pallas GRU encoder (bf16) mismatch vs reference")

    print("KERNEL_OK")
</pallas_src>

<mosaic_0001>
module attributes {stable_mosaic.version = 11 : i64} {
  func.func @_gru_chunk_kernel(%arg0: i32, %arg1: memref<8x8x384xf32, #tpu.memory_space<vmem>>, %arg2: memref<128x384xf32, #tpu.memory_space<vmem>>, %arg3: memref<8x128xf32, #tpu.memory_space<vmem>>) attributes {dimension_semantics = [#tpu.dimension_semantics<arbitrary>], iteration_bounds = array<i64: 1>, scalar_prefetch = 0 : i64, scratch_operands = 0 : i64, tpu.core_type = #tpu.core_type<tc>, window_params = [{transform_indices = @transform_0, window_bounds = array<i64: 8, 8, 384>}, {pipeline_mode = #tpu.pipeline_mode<synchronous>, transform_indices = @transform_1, window_bounds = array<i64: 128, 384>}, {pipeline_mode = #tpu.pipeline_mode<synchronous>, transform_indices = @transform_2, window_bounds = array<i64: 8, 128>}]} {
    %c0_i32 = arith.constant 0 : i32
    %0 = arith.cmpi eq, %arg0, %c0_i32 : i32
    %1 = arith.extui %0 : i1 to i32
    %c0_i32_0 = arith.constant 0 : i32
    %2 = arith.cmpi ne, %1, %c0_i32_0 : i32
    scf.if %2 {
      %278 = tpu.iota {dimensions = array<i32: 1>} : vector<8x128xi32>
      %c32_i32 = arith.constant 32 : i32
      %279 = vector.broadcast %c32_i32 : i32 to vector<8x128xi32>
      %280 = arith.cmpi eq, %278, %279 : vector<8x128xi32>
      %cst_86 = arith.constant 1.000000e+00 : f32
      %cst_87 = arith.constant 0.000000e+00 : f32
      %281 = vector.broadcast %cst_86 : f32 to vector<8x128xf32>
      %282 = vector.broadcast %cst_87 : f32 to vector<8x128xf32>
      %283 = arith.select %280, %281, %282 : vector<8x128xi1>, vector<8x128xf32>
      %c0_88 = arith.constant 0 : index
      %c0_89 = arith.constant 0 : index
      %284 = vector.load %arg3[%c0_88, %c0_89] : memref<8x128xf32, #tpu.memory_space<vmem>>, vector<8x128xf32>
      tpu.vector_store %arg3[%c0_88, %c0_89], %283 {strides = array<i32>} : memref<8x128xf32, #tpu.memory_space<vmem>>, vector<8x128xf32>,
    } else {
    }
    %c0 = arith.constant 0 : index
    %c0_1 = arith.constant 0 : index
    %3 = vector.load %arg2[%c0, %c0_1] : memref<128x384xf32, #tpu.memory_space<vmem>>, vector<128x384xf32>
    %c0_2 = arith.constant 0 : index
    %c0_3 = arith.constant 0 : index
    %4 = vector.load %arg3[%c0_2, %c0_3] : memref<8x128xf32, #tpu.memory_space<vmem>>, vector<8x128xf32>
    %c0_i32_4 = arith.constant 0 : i32
    %5 = arith.index_cast %c0_i32_4 : i32 to index
    %c0_5 = arith.constant 0 : index
    %c0_6 = arith.constant 0 : index
    %6 = vector.load %arg1[%5, %c0_5, %c0_6] : memref<8x8x384xf32, #tpu.memory_space<vmem>>, vector<1x8x384xf32>
    %7 = vector.shape_cast %6 : vector<1x8x384xf32> to vector<8x384xf32>
    %cst = arith.constant dense<0.000000e+00> : vector<8x384xf32>
    %8 = tpu.matmul %4, %3, %cst {dimension_numbers = #tpu.dot_dimension_numbers<[1], [0], [0], [1], [0, 0, 1, 1], [], []>} : vector<8x128xf32>, vector<128x384xf32>, vector<8x384xf32> -> vector<8x384xf32>
    %9 = vector.extract_strided_slice %7 {offsets = [0, 0], sizes = [8, 128], strides = [1, 1]} : vector<8x384xf32> to vector<8x128xf32>
    %10 = vector.extract_strided_slice %8 {offsets = [0, 0], sizes = [8, 128], strides = [1, 1]} : vector<8x384xf32> to vector<8x128xf32>
    %11 = arith.addf %9, %10 : vector<8x128xf32>
    %cst_7 = arith.constant 5.000000e-01 : f32
    %12 = vector.broadcast %cst_7 : f32 to vector<8x128xf32>
    %13 = arith.mulf %12, %11 : vector<8x128xf32>
    %14 = math.tanh %13 : vector<8x128xf32>
    %cst_8 = arith.constant 5.000000e-01 : f32
    %15 = vector.broadcast %cst_8 : f32 to vector<8x128xf32>
    %16 = arith.mulf %15, %14 : vector<8x128xf32>
    %cst_9 = arith.constant 5.000000e-01 : f32
    %17 = vector.broadcast %cst_9 : f32 to vector<8x128xf32>
    %18 = arith.addf %16, %17 : vector<8x128xf32>
    %19 = vector.extract_strided_slice %7 {offsets = [0, 128], sizes = [8, 128], strides = [1, 1]} : vector<8x384xf32> to vector<8x128xf32>
    %20 = vector.extract_strided_slice %8 {offsets = [0, 128], sizes = [8, 128], strides = [1, 1]} : vector<8x384xf32> to vector<8x128xf32>
    %21 = arith.addf %19, %20 : vector<8x128xf32>
    %cst_10 = arith.constant 5.000000e-01 : f32
    %22 = vector.broadcast %cst_10 : f32 to vector<8x128xf32>
    %23 = arith.mulf %22, %21 : vector<8x128xf32>
    %24 = math.tanh %23 : vector<8x128xf32>
    %cst_11 = arith.constant 5.000000e-01 : f32
    %25 = vector.broadcast %cst_11 : f32 to vector<8x128xf32>
    %26 = arith.mulf %25, %24 : vector<8x128xf32>
    %cst_12 = arith.constant 5.000000e-01 : f32
    %27 = vector.broadcast %cst_12 : f32 to vector<8x128xf32>
    %28 = arith.addf %26, %27 : vector<8x128xf32>
    %29 = vector.extract_strided_slice %7 {offsets = [0, 256], sizes = [8, 128], strides = [1, 1]} : vector<8x384xf32> to vector<8x128xf32>
    %30 = vector.extract_strided_slice %8 {offsets = [0, 256], sizes = [8, 128], strides = [1, 1]} : vector<8x384xf32> to vector<8x128xf32>
    %31 = arith.mulf %18, %30 : vector<8x128xf32>
    %32 = arith.addf %29, %31 : vector<8x128xf32>
    %33 = math.tanh %32 : vector<8x128xf32>
    %cst_13 = arith.constant 1.000000e+00 : f32
    %34 = vector.broadcast %cst_13 : f32 to vector<8x128xf32>
    %35 = arith.subf %34, %28 : vector<8x128xf32>
    %36 = arith.mulf %35, %33 : vector<8x128xf32>
    %37 = arith.mulf %28, %4 : vector<8x128xf32>
    %38 = arith.addf %36, %37 : vector<8x128xf32>
    %c1_i32 = arith.constant 1 : i32
    %39 = arith.index_cast %c1_i32 : i32 to index
    %c0_14 = arith.constant 0 : index
    %c0_15 = arith.constant 0 : index
    %40 = vector.load %arg1[%39, %c0_14, %c0_15] : memref<8x8x384xf32, #tpu.memory_space<vmem>>, vector<1x8x384xf32>
    %41 = vector.shape_cast %40 : vector<1x8x384xf32> to vector<8x384xf32>
    %cst_16 = arith.constant dense<0.000000e+00> : vector<8x384xf32>
    %42 = tpu.matmul %38, %3, %cst_16 {dimension_numbers = #tpu.dot_dimension_numbers<[1], [0], [0], [1], [0, 0, 1, 1], [], []>} : vector<8x128xf32>, vector<128x384xf32>, vector<8x384xf32> -> vector<8x384xf32>
    %43 = vector.extract_strided_slice %41 {offsets = [0, 0], sizes = [8, 128], strides = [1, 1]} : vector<8x384xf32> to vector<8x128xf32>
    %44 = vector.extract_strided_slice %42 {offsets = [0, 0], sizes = [8, 128], strides = [1, 1]} : vector<8x384xf32> to vector<8x128xf32>
    %45 = arith.addf %43, %44 : vector<8x128xf32>
    %cst_17 = arith.constant 5.000000e-01 : f32
    %46 = vector.broadcast %cst_17 : f32 to vector<8x128xf32>
    %47 = arith.mulf %46, %45 : vector<8x128xf32>
    %48 = math.tanh %47 : vector<8x128xf32>
    %cst_18 = arith.constant 5.000000e-01 : f32
    %49 = vector.broadcast %cst_18 : f32 to vector<8x128xf32>
    %50 = arith.mulf %49, %48 : vector<8x128xf32>
    %cst_19 = arith.constant 5.000000e-01 : f32
    %51 = vector.broadcast %cst_19 : f32 to vector<8x128xf32>
    %52 = arith.addf %50, %51 : vector<8x128xf32>
    %53 = vector.extract_strided_slice %41 {offsets = [0, 128], sizes = [8, 128], strides = [1, 1]} : vector<8x384xf32> to vector<8x128xf32>
    %54 = vector.extract_strided_slice %42 {offsets = [0, 128], sizes = [8, 128], strides = [1, 1]} : vector<8x384xf32> to vector<8x128xf32>
    %55 = arith.addf %53, %54 : vector<8x128xf32>
    %cst_20 = arith.constant 5.000000e-01 : f32
    %56 = vector.broadcast %cst_20 : f32 to vector<8x128xf32>
    %57 = arith.mulf %56, %55 : vector<8x128xf32>
    %58 = math.tanh %57 : vector<8x128xf32>
    %cst_21 = arith.constant 5.000000e-01 : f32
    %59 = vector.broadcast %cst_21 : f32 to vector<8x128xf32>
    %60 = arith.mulf %59, %58 : vector<8x128xf32>
    %cst_22 = arith.constant 5.000000e-01 : f32
    %61 = vector.broadcast %cst_22 : f32 to vector<8x128xf32>
    %62 = arith.addf %60, %61 : vector<8x128xf32>
    %63 = vector.extract_strided_slice %41 {offsets = [0, 256], sizes = [8, 128], strides = [1, 1]} : vector<8x384xf32> to vector<8x128xf32>
    %64 = vector.extract_strided_slice %42 {offsets = [0, 256], sizes = [8, 128], strides = [1, 1]} : vector<8x384xf32> to vector<8x128xf32>
    %65 = arith.mulf %52, %64 : vector<8x128xf32>
    %66 = arith.addf %63, %65 : vector<8x128xf32>
    %67 = math.tanh %66 : vector<8x128xf32>
    %cst_23 = arith.constant 1.000000e+00 : f32
    %68 = vector.broadcast %cst_23 : f32 to vector<8x128xf32>
    %69 = arith.subf %68, %62 : vector<8x128xf32>
    %70 = arith.mulf %69, %67 : vector<8x128xf32>
    %71 = arith.mulf %62, %38 : vector<8x128xf32>
    %72 = arith.addf %70, %71 : vector<8x128xf32>
    %c2_i32 = arith.constant 2 : i32
    %73 = arith.index_cast %c2_i32 : i32 to index
    %c0_24 = arith.constant 0 : index
    %c0_25 = arith.constant 0 : index
    %74 = vector.load %arg1[%73, %c0_24, %c0_25] : memref<8x8x384xf32, #tpu.memory_space<vmem>>, vector<1x8x384xf32>
    %75 = vector.shape_cast %74 : vector<1x8x384xf32> to vector<8x384xf32>
    %cst_26 = arith.constant dense<0.000000e+00> : vector<8x384xf32>
    %76 = tpu.matmul %72, %3, %cst_26 {dimension_numbers = #tpu.dot_dimension_numbers<[1], [0], [0], [1], [0, 0, 1, 1], [], []>} : vector<8x128xf32>, vector<128x384xf32>, vector<8x384xf32> -> vector<8x384xf32>
    %77 = vector.extract_strided_slice %75 {offsets = [0, 0], sizes = [8, 128], strides = [1, 1]} : vector<8x384xf32> to vector<8x128xf32>
    %78 = vector.extract_strided_slice %76 {offsets = [0, 0], sizes = [8, 128], strides = [1, 1]} : vector<8x384xf32> to vector<8x128xf32>
    %79 = arith.addf %77, %78 : vector<8x128xf32>
    %cst_27 = arith.constant 5.000000e-01 : f32
    %80 = vector.broadcast %cst_27 : f32 to vector<8x128xf32>
    %81 = arith.mulf %80, %79 : vector<8x128xf32>
    %82 = math.tanh %81 : vector<8x128xf32>
    %cst_28 = arith.constant 5.000000e-01 : f32
    %83 = vector.broadcast %cst_28 : f32 to vector<8x128xf32>
    %84 = arith.mulf %83, %82 : vector<8x128xf32>
    %cst_29 = arith.constant 5.000000e-01 : f32
    %85 = vector.broadcast %cst_29 : f32 to vector<8x128xf32>
    %86 = arith.addf %84, %85 : vector<8x128xf32>
    %87 = vector.extract_strided_slice %75 {offsets = [0, 128], sizes = [8, 128], strides = [1, 1]} : vector<8x384xf32> to vector<8x128xf32>
    %88 = vector.extract_strided_slice %76 {offsets = [0, 128], sizes = [8, 128], strides = [1, 1]} : vector<8x384xf32> to vector<8x128xf32>
    %89 = arith.addf %87, %88 : vector<8x128xf32>
    %cst_30 = arith.constant 5.000000e-01 : f32
    %90 = vector.broadcast %cst_30 : f32 to vector<8x128xf32>
    %91 = arith.mulf %90, %89 : vector<8x128xf32>
    %92 = math.tanh %91 : vector<8x128xf32>
    %cst_31 = arith.constant 5.000000e-01 : f32
    %93 = vector.broadcast %cst_31 : f32 to vector<8x128xf32>
    %94 = arith.mulf %93, %92 : vector<8x128xf32>
    %cst_32 = arith.constant 5.000000e-01 : f32
    %95 = vector.broadcast %cst_32 : f32 to vector<8x128xf32>
    %96 = arith.addf %94, %95 : vector<8x128xf32>
    %97 = vector.extract_strided_slice %75 {offsets = [0, 256], sizes = [8, 128], strides = [1, 1]} : vector<8x384xf32> to vector<8x128xf32>
    %98 = vector.extract_strided_slice %76 {offsets = [0, 256], sizes = [8, 128], strides = [1, 1]} : vector<8x384xf32> to vector<8x128xf32>
    %99 = arith.mulf %86, %98 : vector<8x128xf32>
    %100 = arith.addf %97, %99 : vector<8x128xf32>
    %101 = math.tanh %100 : vector<8x128xf32>
    %cst_33 = arith.constant 1.000000e+00 : f32
    %102 = vector.broadcast %cst_33 : f32 to vector<8x128xf32>
    %103 = arith.subf %102, %96 : vector<8x128xf32>
    %104 = arith.mulf %103, %101 : vector<8x128xf32>
    %105 = arith.mulf %96, %72 : vector<8x128xf32>
    %106 = arith.addf %104, %105 : vector<8x128xf32>
    %c3_i32 = arith.constant 3 : i32
    %107 = arith.index_cast %c3_i32 : i32 to index
    %c0_34 = arith.constant 0 : index
    %c0_35 = arith.constant 0 : index
    %108 = vector.load %arg1[%107, %c0_34, %c0_35] : memref<8x8x384xf32, #tpu.memory_space<vmem>>, vector<1x8x384xf32>
    %109 = vector.shape_cast %108 : vector<1x8x384xf32> to vector<8x384xf32>
    %cst_36 = arith.constant dense<0.000000e+00> : vector<8x384xf32>
    %110 = tpu.matmul %106, %3, %cst_36 {dimension_numbers = #tpu.dot_dimension_numbers<[1], [0], [0], [1], [0, 0, 1, 1], [], []>} : vector<8x128xf32>, vector<128x384xf32>, vector<8x384xf32> -> vector<8x384xf32>
    %111 = vector.extract_strided_slice %109 {offsets = [0, 0], sizes = [8, 128], strides = [1, 1]} : vector<8x384xf32> to vector<8x128xf32>
    %112 = vector.extract_strided_slice %110 {offsets = [0, 0], sizes = [8, 128], strides = [1, 1]} : vector<8x384xf32> to vector<8x128xf32>
    %113 = arith.addf %111, %112 : vector<8x128xf32>
    %cst_37 = arith.constant 5.000000e-01 : f32
    %114 = vector.broadcast %cst_37 : f32 to vector<8x128xf32>
    %115 = arith.mulf %114, %113 : vector<8x128xf32>
    %116 = math.tanh %115 : vector<8x128xf32>
    %cst_38 = arith.constant 5.000000e-01 : f32
    %117 = vector.broadcast %cst_38 : f32 to vector<8x128xf32>
    %118 = arith.mulf %117, %116 : vector<8x128xf32>
    %cst_39 = arith.constant 5.000000e-01 : f32
    %119 = vector.broadcast %cst_39 : f32 to vector<8x128xf32>
    %120 = arith.addf %118, %119 : vector<8x128xf32>
    %121 = vector.extract_strided_slice %109 {offsets = [0, 128], sizes = [8, 128], strides = [1, 1]} : vector<8x384xf32> to vector<8x128xf32>
    %122 = vector.extract_strided_slice %110 {offsets = [0, 128], sizes = [8, 128], strides = [1, 1]} : vector<8x384xf32> to vector<8x128xf32>
    %123 = arith.addf %121, %122 : vector<8x128xf32>
    %cst_40 = arith.constant 5.000000e-01 : f32
    %124 = vector.broadcast %cst_40 : f32 to vector<8x128xf32>
    %125 = arith.mulf %124, %123 : vector<8x128xf32>
    %126 = math.tanh %125 : vector<8x128xf32>
    %cst_41 = arith.constant 5.000000e-01 : f32
    %127 = vector.broadcast %cst_41 : f32 to vector<8x128xf32>
    %128 = arith.mulf %127, %126 : vector<8x128xf32>
    %cst_42 = arith.constant 5.000000e-01 : f32
    %129 = vector.broadcast %cst_42 : f32 to vector<8x128xf32>
    %130 = arith.addf %128, %129 : vector<8x128xf32>
    %131 = vector.extract_strided_slice %109 {offsets = [0, 256], sizes = [8, 128], strides = [1, 1]} : vector<8x384xf32> to vector<8x128xf32>
    %132 = vector.extract_strided_slice %110 {offsets = [0, 256], sizes = [8, 128], strides = [1, 1]} : vector<8x384xf32> to vector<8x128xf32>
    %133 = arith.mulf %120, %132 : vector<8x128xf32>
    %134 = arith.addf %131, %133 : vector<8x128xf32>
    %135 = math.tanh %134 : vector<8x128xf32>
    %cst_43 = arith.constant 1.000000e+00 : f32
    %136 = vector.broadcast %cst_43 : f32 to vector<8x128xf32>
    %137 = arith.subf %136, %130 : vector<8x128xf32>
    %138 = arith.mulf %137, %135 : vector<8x128xf32>
    %139 = arith.mulf %130, %106 : vector<8x128xf32>
    %140 = arith.addf %138, %139 : vector<8x128xf32>
    %c4_i32 = arith.constant 4 : i32
    %141 = arith.index_cast %c4_i32 : i32 to index
    %c0_44 = arith.constant 0 : index
    %c0_45 = arith.constant 0 : index
    %142 = vector.load %arg1[%141, %c0_44, %c0_45] : memref<8x8x384xf32, #tpu.memory_space<vmem>>, vector<1x8x384xf32>
    %143 = vector.shape_cast %142 : vector<1x8x384xf32> to vector<8x384xf32>
    %cst_46 = arith.constant dense<0.000000e+00> : vector<8x384xf32>
    %144 = tpu.matmul %140, %3, %cst_46 {dimension_numbers = #tpu.dot_dimension_numbers<[1], [0], [0], [1], [0, 0, 1, 1], [], []>} : vector<8x128xf32>, vector<128x384xf32>, vector<8x384xf32> -> vector<8x384xf32>
    %145 = vector.extract_strided_slice %143 {offsets = [0, 0], sizes = [8, 128], strides = [1, 1]} : vector<8x384xf32> to vector<8x128xf32>
    %146 = vector.extract_strided_slice %144 {offsets = [0, 0], sizes = [8, 128], strides = [1, 1]} : vector<8x384xf32> to vector<8x128xf32>
    %147 = arith.addf %145, %146 : vector<8x128xf32>
    %cst_47 = arith.constant 5.000000e-01 : f32
    %148 = vector.broadcast %cst_47 : f32 to vector<8x128xf32>
    %149 = arith.mulf %148, %147 : vector<8x128xf32>
    %150 = math.tanh %149 : vector<8x128xf32>
    %cst_48 = arith.constant 5.000000e-01 : f32
    %151 = vector.broadcast %cst_48 : f32 to vector<8x128xf32>
    %152 = arith.mulf %151, %150 : vector<8x128xf32>
    %cst_49 = arith.constant 5.000000e-01 : f32
    %153 = vector.broadcast %cst_49 : f32 to vector<8x128xf32>
    %154 = arith.addf %152, %153 : vector<8x128xf32>
    %155 = vector.extract_strided_slice %143 {offsets = [0, 128], sizes = [8, 128], strides = [1, 1]} : vector<8x384xf32> to vector<8x128xf32>
    %156 = vector.extract_strided_slice %144 {offsets = [0, 128], sizes = [8, 128], strides = [1, 1]} : vector<8x384xf32> to vector<8x128xf32>
    %157 = arith.addf %155, %156 : vector<8x128xf32>
    %cst_50 = arith.constant 5.000000e-01 : f32
    %158 = vector.broadcast %cst_50 : f32 to vector<8x128xf32>
    %159 = arith.mulf %158, %157 : vector<8x128xf32>
    %160 = math.tanh %159 : vector<8x128xf32>
    %cst_51 = arith.constant 5.000000e-01 : f32
    %161 = vector.broadcast %cst_51 : f32 to vector<8x128xf32>
    %162 = arith.mulf %161, %160 : vector<8x128xf32>
    %cst_52 = arith.constant 5.000000e-01 : f32
    %163 = vector.broadcast %cst_52 : f32 to vector<8x128xf32>
    %164 = arith.addf %162, %163 : vector<8x128xf32>
    %165 = vector.extract_strided_slice %143 {offsets = [0, 256], sizes = [8, 128], strides = [1, 1]} : vector<8x384xf32> to vector<8x128xf32>
    %166 = vector.extract_strided_slice %144 {offsets = [0, 256], sizes = [8, 128], strides = [1, 1]} : vector<8x384xf32> to vector<8x128xf32>
    %167 = arith.mulf %154, %166 : vector<8x128xf32>
    %168 = arith.addf %165, %167 : vector<8x128xf32>
    %169 = math.tanh %168 : vector<8x128xf32>
    %cst_53 = arith.constant 1.000000e+00 : f32
    %170 = vector.broadcast %cst_53 : f32 to vector<8x128xf32>
    %171 = arith.subf %170, %164 : vector<8x128xf32>
    %172 = arith.mulf %171, %169 : vector<8x128xf32>
    %173 = arith.mulf %164, %140 : vector<8x128xf32>
    %174 = arith.addf %172, %173 : vector<8x128xf32>
    %c5_i32 = arith.constant 5 : i32
    %175 = arith.index_cast %c5_i32 : i32 to index
    %c0_54 = arith.constant 0 : index
    %c0_55 = arith.constant 0 : index
    %176 = vector.load %arg1[%175, %c0_54, %c0_55] : memref<8x8x384xf32, #tpu.memory_space<vmem>>, vector<1x8x384xf32>
    %177 = vector.shape_cast %176 : vector<1x8x384xf32> to vector<8x384xf32>
    %cst_56 = arith.constant dense<0.000000e+00> : vector<8x384xf32>
    %178 = tpu.matmul %174, %3, %cst_56 {dimension_numbers = #tpu.dot_dimension_numbers<[1], [0], [0], [1], [0, 0, 1, 1], [], []>} : vector<8x128xf32>, vector<128x384xf32>, vector<8x384xf32> -> vector<8x384xf32>
    %179 = vector.extract_strided_slice %177 {offsets = [0, 0], sizes = [8, 128], strides = [1, 1]} : vector<8x384xf32> to vector<8x128xf32>
    %180 = vector.extract_strided_slice %178 {offsets = [0, 0], sizes = [8, 128], strides = [1, 1]} : vector<8x384xf32> to vector<8x128xf32>
    %181 = arith.addf %179, %180 : vector<8x128xf32>
    %cst_57 = arith.constant 5.000000e-01 : f32
    %182 = vector.broadcast %cst_57 : f32 to vector<8x128xf32>
    %183 = arith.mulf %182, %181 : vector<8x128xf32>
    %184 = math.tanh %183 : vector<8x128xf32>
    %cst_58 = arith.constant 5.000000e-01 : f32
    %185 = vector.broadcast %cst_58 : f32 to vector<8x128xf32>
    %186 = arith.mulf %185, %184 : vector<8x128xf32>
    %cst_59 = arith.constant 5.000000e-01 : f32
    %187 = vector.broadcast %cst_59 : f32 to vector<8x128xf32>
    %188 = arith.addf %186, %187 : vector<8x128xf32>
    %189 = vector.extract_strided_slice %177 {offsets = [0, 128], sizes = [8, 128], strides = [1, 1]} : vector<8x384xf32> to vector<8x128xf32>
    %190 = vector.extract_strided_slice %178 {offsets = [0, 128], sizes = [8, 128], strides = [1, 1]} : vector<8x384xf32> to vector<8x128xf32>
    %191 = arith.addf %189, %190 : vector<8x128xf32>
    %cst_60 = arith.constant 5.000000e-01 : f32
    %192 = vector.broadcast %cst_60 : f32 to vector<8x128xf32>
    %193 = arith.mulf %192, %191 : vector<8x128xf32>
    %194 = math.tanh %193 : vector<8x128xf32>
    %cst_61 = arith.constant 5.000000e-01 : f32
    %195 = vector.broadcast %cst_61 : f32 to vector<8x128xf32>
    %196 = arith.mulf %195, %194 : vector<8x128xf32>
    %cst_62 = arith.constant 5.000000e-01 : f32
    %197 = vector.broadcast %cst_62 : f32 to vector<8x128xf32>
    %198 = arith.addf %196, %197 : vector<8x128xf32>
    %199 = vector.extract_strided_slice %177 {offsets = [0, 256], sizes = [8, 128], strides = [1, 1]} : vector<8x384xf32> to vector<8x128xf32>
    %200 = vector.extract_strided_slice %178 {offsets = [0, 256], sizes = [8, 128], strides = [1, 1]} : vector<8x384xf32> to vector<8x128xf32>
    %201 = arith.mulf %188, %200 : vector<8x128xf32>
    %202 = arith.addf %199, %201 : vector<8x128xf32>
    %203 = math.tanh %202 : vector<8x128xf32>
    %cst_63 = arith.constant 1.000000e+00 : f32
    %204 = vector.broadcast %cst_63 : f32 to vector<8x128xf32>
    %205 = arith.subf %204, %198 : vector<8x128xf32>
    %206 = arith.mulf %205, %203 : vector<8x128xf32>
    %207 = arith.mulf %198, %174 : vector<8x128xf32>
    %208 = arith.addf %206, %207 : vector<8x128xf32>
    %c6_i32 = arith.constant 6 : i32
    %209 = arith.index_cast %c6_i32 : i32 to index
    %c0_64 = arith.constant 0 : index
    %c0_65 = arith.constant 0 : index
    %210 = vector.load %arg1[%209, %c0_64, %c0_65] : memref<8x8x384xf32, #tpu.memory_space<vmem>>, vector<1x8x384xf32>
    %211 = vector.shape_cast %210 : vector<1x8x384xf32> to vector<8x384xf32>
    %cst_66 = arith.constant dense<0.000000e+00> : vector<8x384xf32>
    %212 = tpu.matmul %208, %3, %cst_66 {dimension_numbers = #tpu.dot_dimension_numbers<[1], [0], [0], [1], [0, 0, 1, 1], [], []>} : vector<8x128xf32>, vector<128x384xf32>, vector<8x384xf32> -> vector<8x384xf32>
    %213 = vector.extract_strided_slice %211 {offsets = [0, 0], sizes = [8, 128], strides = [1, 1]} : vector<8x384xf32> to vector<8x128xf32>
    %214 = vector.extract_strided_slice %212 {offsets = [0, 0], sizes = [8, 128], strides = [1, 1]} : vector<8x384xf32> to vector<8x128xf32>
    %215 = arith.addf %213, %214 : vector<8x128xf32>
    %cst_67 = arith.constant 5.000000e-01 : f32
    %216 = vector.broadcast %cst_67 : f32 to vector<8x128xf32>
    %217 = arith.mulf %216, %215 : vector<8x128xf32>
    %218 = math.tanh %217 : vector<8x128xf32>
    %cst_68 = arith.constant 5.000000e-01 : f32
    %219 = vector.broadcast %cst_68 : f32 to vector<8x128xf32>
    %220 = arith.mulf %219, %218 : vector<8x128xf32>
    %cst_69 = arith.constant 5.000000e-01 : f32
    %221 = vector.broadcast %cst_69 : f32 to vector<8x128xf32>
    %222 = arith.addf %220, %221 : vector<8x128xf32>
    %223 = vector.extract_strided_slice %211 {offsets = [0, 128], sizes = [8, 128], strides = [1, 1]} : vector<8x384xf32> to vector<8x128xf32>
    %224 = vector.extract_strided_slice %212 {offsets = [0, 128], sizes = [8, 128], strides = [1, 1]} : vector<8x384xf32> to vector<8x128xf32>
    %225 = arith.addf %223, %224 : vector<8x128xf32>
    %cst_70 = arith.constant 5.000000e-01 : f32
    %226 = vector.broadcast %cst_70 : f32 to vector<8x128xf32>
    %227 = arith.mulf %226, %225 : vector<8x128xf32>
    %228 = math.tanh %227 : vector<8x128xf32>
    %cst_71 = arith.constant 5.000000e-01 : f32
    %229 = vector.broadcast %cst_71 : f32 to vector<8x128xf32>
    %230 = arith.mulf %229, %228 : vector<8x128xf32>
    %cst_72 = arith.constant 5.000000e-01 : f32
    %231 = vector.broadcast %cst_72 : f32 to vector<8x128xf32>
    %232 = arith.addf %230, %231 : vector<8x128xf32>
    %233 = vector.extract_strided_slice %211 {offsets = [0, 256], sizes = [8, 128], strides = [1, 1]} : vector<8x384xf32> to vector<8x128xf32>
    %234 = vector.extract_strided_slice %212 {offsets = [0, 256], sizes = [8, 128], strides = [1, 1]} : vector<8x384xf32> to vector<8x128xf32>
    %235 = arith.mulf %222, %234 : vector<8x128xf32>
    %236 = arith.addf %233, %235 : vector<8x128xf32>
    %237 = math.tanh %236 : vector<8x128xf32>
    %cst_73 = arith.constant 1.000000e+00 : f32
    %238 = vector.broadcast %cst_73 : f32 to vector<8x128xf32>
    %239 = arith.subf %238, %232 : vector<8x128xf32>
    %240 = arith.mulf %239, %237 : vector<8x128xf32>
    %241 = arith.mulf %232, %208 : vector<8x128xf32>
    %242 = arith.addf %240, %241 : vector<8x128xf32>
    %c7_i32 = arith.constant 7 : i32
    %243 = arith.index_cast %c7_i32 : i32 to index
    %c0_74 = arith.constant 0 : index
    %c0_75 = arith.constant 0 : index
    %244 = vector.load %arg1[%243, %c0_74, %c0_75] : memref<8x8x384xf32, #tpu.memory_space<vmem>>, vector<1x8x384xf32>
    %245 = vector.shape_cast %244 : vector<1x8x384xf32> to vector<8x384xf32>
    %cst_76 = arith.constant dense<0.000000e+00> : vector<8x384xf32>
    %246 = tpu.matmul %242, %3, %cst_76 {dimension_numbers = #tpu.dot_dimension_numbers<[1], [0], [0], [1], [0, 0, 1, 1], [], []>} : vector<8x128xf32>, vector<128x384xf32>, vector<8x384xf32> -> vector<8x384xf32>
    %247 = vector.extract_strided_slice %245 {offsets = [0, 0], sizes = [8, 128], strides = [1, 1]} : vector<8x384xf32> to vector<8x128xf32>
    %248 = vector.extract_strided_slice %246 {offsets = [0, 0], sizes = [8, 128], strides = [1, 1]} : vector<8x384xf32> to vector<8x128xf32>
    %249 = arith.addf %247, %248 : vector<8x128xf32>
    %cst_77 = arith.constant 5.000000e-01 : f32
    %250 = vector.broadcast %cst_77 : f32 to vector<8x128xf32>
    %251 = arith.mulf %250, %249 : vector<8x128xf32>
    %252 = math.tanh %251 : vector<8x128xf32>
    %cst_78 = arith.constant 5.000000e-01 : f32
    %253 = vector.broadcast %cst_78 : f32 to vector<8x128xf32>
    %254 = arith.mulf %253, %252 : vector<8x128xf32>
    %cst_79 = arith.constant 5.000000e-01 : f32
    %255 = vector.broadcast %cst_79 : f32 to vector<8x128xf32>
    %256 = arith.addf %254, %255 : vector<8x128xf32>
    %257 = vector.extract_strided_slice %245 {offsets = [0, 128], sizes = [8, 128], strides = [1, 1]} : vector<8x384xf32> to vector<8x128xf32>
    %258 = vector.extract_strided_slice %246 {offsets = [0, 128], sizes = [8, 128], strides = [1, 1]} : vector<8x384xf32> to vector<8x128xf32>
    %259 = arith.addf %257, %258 : vector<8x128xf32>
    %cst_80 = arith.constant 5.000000e-01 : f32
    %260 = vector.broadcast %cst_80 : f32 to vector<8x128xf32>
    %261 = arith.mulf %260, %259 : vector<8x128xf32>
    %262 = math.tanh %261 : vector<8x128xf32>
    %cst_81 = arith.constant 5.000000e-01 : f32
    %263 = vector.broadcast %cst_81 : f32 to vector<8x128xf32>
    %264 = arith.mulf %263, %262 : vector<8x128xf32>
    %cst_82 = arith.constant 5.000000e-01 : f32
    %265 = vector.broadcast %cst_82 : f32 to vector<8x128xf32>
    %266 = arith.addf %264, %265 : vector<8x128xf32>
    %267 = vector.extract_strided_slice %245 {offsets = [0, 256], sizes = [8, 128], strides = [1, 1]} : vector<8x384xf32> to vector<8x128xf32>
    %268 = vector.extract_strided_slice %246 {offsets = [0, 256], sizes = [8, 128], strides = [1, 1]} : vector<8x384xf32> to vector<8x128xf32>
    %269 = arith.mulf %256, %268 : vector<8x128xf32>
    %270 = arith.addf %267, %269 : vector<8x128xf32>
    %271 = math.tanh %270 : vector<8x128xf32>
    %cst_83 = arith.constant 1.000000e+00 : f32
    %272 = vector.broadcast %cst_83 : f32 to vector<8x128xf32>
    %273 = arith.subf %272, %266 : vector<8x128xf32>
    %274 = arith.mulf %273, %271 : vector<8x128xf32>
    %275 = arith.mulf %266, %242 : vector<8x128xf32>
    %276 = arith.addf %274, %275 : vector<8x128xf32>
    %c8_i32 = arith.constant 8 : i32
    %c0_84 = arith.constant 0 : index
    %c0_85 = arith.constant 0 : index
    %277 = vector.load %arg3[%c0_84, %c0_85] : memref<8x128xf32, #tpu.memory_space<vmem>>, vector<8x128xf32>
    tpu.vector_store %arg3[%c0_84, %c0_85], %276 {strides = array<i32>} : memref<8x128xf32, #tpu.memory_space<vmem>>, vector<8x128xf32>,
    return
  }
  func.func @transform_0(%arg0: i32) -> (i32, i32, i32) {
    %c0_i32 = arith.constant 0 : i32
    %c0_i32_0 = arith.constant 0 : i32
    %c0_i32_1 = arith.constant 0 : i32
    return %arg0, %c0_i32, %c0_i32_0 : i32, i32, i32
  }
  func.func @transform_1(%arg0: i32) -> (i32, i32) {
    %c0_i32 = arith.constant 0 : i32
    %c0_i32_0 = arith.constant 0 : i32
    %c0_i32_1 = arith.constant 0 : i32
    return %c0_i32, %c0_i32_0 : i32, i32
  }
  func.func @transform_2(%arg0: i32) -> (i32, i32) {
    %c0_i32 = arith.constant 0 : i32
    %c0_i32_0 = arith.constant 0 : i32
    %c0_i32_1 = arith.constant 0 : i32
    return %c0_i32, %c0_i32_0 : i32, i32
  }
}

</mosaic_0001>

<bundles_post_ra>
// kernel: tpu_custom_call.1
= control target key start
LH: loop header
LB: loop body
LE: loop exit
PB: predicated region body
PF: predicated region fallthrough
CT: control target
= control target key end

     0   :  { %7 = vsyncpa [#allocation3], 0  ;;  %s2799_s0 = inlined_call_operand.hbm [shape: f32[8,8,384], index: 0, kind: input, shape index: {}]   ;;  %s2800_s1 = inlined_call_operand.hbm [shape: f32[128,384], index: 1, kind: input, shape index: {}]   ;;  %s2801_s2 = inlined_call_operand.hbm [shape: f32[8,128], index: 2, kind: output, shape index: {}]  }
   0x1   :  { %8 = vsyncpa [#allocation6], 0 }
   0x2   :  { %9 = vsyncpa [#allocation4], 0  ;;  %s2404_s9 = smov [#allocation2]   ;;  %s2332_s13 = scalar_lea.hbm %s2799_s0, 3072 }
   0x3   :  { %s15_s10 = sshll.u32 %s2404_s9, 4  ;;  %p2333_p0 = scmp.ne.s32.totalorder %s2799_s0, %s2332_s13  ;;  %s16_s10 = int_to_ptr.vmem [resolvable:$true] %s15_s10 }
   0x4   :  { %p2336_p1 = scmp.lt.u32.totalorder %s2332_s13, %s2799_s0 }
   0x6   :  { %p2338_p2 = pnand %p2336_p1, %p2333_p0 }
   0x8   :  { %2341 = shalt.err (!%p2338_p2)
}
   0x9   :  { %s2342_s18 = scalar_lea.vmem %s16_s10, 3072  ;;  %p2347_p4 = scmp.lt.s32.totalorder %s16_s10, %s16_s10 }
   0xa   :  { %p2343_p3 = scmp.ne.s32.totalorder %s16_s10, %s2342_s18  ;;  %p2348_p5 = scmp.lt.s32.totalorder %s2342_s18, %s2342_s18 }
   0xc   :  { %p2349_p6 = por %p2348_p5, %p2347_p4 }
   0xe   :  { %p2350_p7 = pnand %p2349_p6, %p2343_p3 }
  0x10   :  { %2353 = shalt.err (!%p2350_p7)
}
  0x11   :  { %s2405_s19 = smov 384   ;;  %s2406_s20 = smov 24  }
  0x12   :  { %21 = dma.hbm_to_vmem [thread:$0]  %s2799_s0, 3072, %s16_s10, [#allocation3], %s2405_s19, %s2405_s19, %s2406_s20  }
  0x13   :  { %s2407_s23 = smov [#allocation5]   ;;  %s2354_s27 = scalar_lea.hbm %s2800_s1, 6144 }
  0x14   :  { %s27_s24 = sshll.u32 %s2407_s23, 4  ;;  %p2355_p8 = scmp.ne.s32.totalorder %s2800_s1, %s2354_s27  ;;  %s28_s24 = int_to_ptr.vmem [resolvable:$true] %s27_s24 }
  0x15   :  { %p2358_p9 = scmp.lt.u32.totalorder %s2354_s27, %s2800_s1 }
  0x17   :  { %p2360_p10 = pnand %p2358_p9, %p2355_p8 }
  0x19   :  { %2363 = shalt.err (!%p2360_p10)
}
  0x1a   :  { %s2364_s4 = scalar_lea.vmem %s28_s24, 6144  ;;  %p2369_p12 = scmp.lt.s32.totalorder %s28_s24, %s28_s24 }
  0x1b   :  { %p2365_p11 = scmp.ne.s32.totalorder %s28_s24, %s2364_s4  ;;  %p2370_p13 = scmp.lt.s32.totalorder %s2364_s4, %s2364_s4 }
  0x1d   :  { %p2371_p0 = por %p2370_p13, %p2369_p12 }
  0x1f   :  { %p2372_p1 = pnand %p2371_p0, %p2365_p11 }
  0x21   :  { %2375 = shalt.err (!%p2372_p1)
}
  0x22   :  { %33 = dma.hbm_to_vmem [thread:$0]  %s2800_s1, 6144, %s28_s24, [#allocation6], %s2405_s19, %s2405_s19, %s2406_s20  }
  0x23   :  { %2398 = dma.done.wait [#allocation3], 3072  }
  0x24   :  { %2399 = vsyncadd [#allocation3], 4294964224 }
  0x25   :  { %2400 = dma.done.wait [#allocation6], 6144  }
  0x26   :  { %2401 = vsyncadd [#allocation6], 4294961152  ;;  %v2408_v0 = vmov 0.0|0.0   ;;  %v2409_v1 = vmov 0.0   ;;  %vm2410_vm0 = vmmov 0   ;;  %v50_v2 = vld [vmem:[#allocation5 + $0x8] sm:$0xff]  ;;  %v44_v57 = vlaneseq }
  0x27   :  { %1858 = vmatprep.subr.bf16.mxu1 %v2408_v0  ;;  %165 = vmatprep.mubr.f32.mxu0 %v2409_v1  ;;  %v53_v3 = vld [vmem:[#allocation5 + $0x20] sm:$0xff]  ;;  %v52_v6 = vld [vmem:[#allocation5 + $0x18] sm:$0xff]  ;;  %v59_v8 = vld [vmem:[#allocation5 + $0x50] sm:$0xff]  ;;  %s2412_s1 = smov [#allocation7]  }
  0x28   :  { %1578 = vmatprep.mubr.msk.f32.mxu1 %vm2410_vm0, %v2409_v1  ;;  %v49_v4 = vld [vmem:[#allocation5] sm:$0xff]  ;;  %v2456_v5 = vpack.c.bf16 %v53_v3, %v50_v2  ;;  %v56_v7 = vld [vmem:[#allocation5 + $0x38] sm:$0xff]  ;;  %v55_v11 = vld [vmem:[#allocation5 + $0x30] sm:$0xff]  ;;  %s1400_s6 = sshll.u32 %s2412_s1, 4  ;;  %s1401_s6 = int_to_ptr.vmem [resolvable:$true] %s1400_s6 }
  0x29   :  { %v2458_v9 = vpack.c.bf16 %v52_v6, %v49_v4  ;;  %v2460_v10 = vpack.c.bf16 %v59_v8, %v56_v7  ;;  %v58_v12 = vld [vmem:[#allocation5 + $0x48] sm:$0xff]  ;;  %v65_v14 = vld [vmem:[#allocation5 + $0x80] sm:$0xff]  ;;  %v64_v18 = vld [vmem:[#allocation5 + $0x78] sm:$0xff]  ;;  %v45_v6 = vand.u32 127, %v44_v57  ;;  %s2376_s7 = scalar_lea.vmem %s1401_s6, 128  ;;  %p2381_p3 = scmp.lt.s32.totalorder %s1401_s6, %s1401_s6 }
  0x2a   :  { %v62_v13 = vld [vmem:[#allocation5 + $0x68] sm:$0xff]  ;;  %1827 = vmatprep.subr.bf16.mxu0 %v2456_v5  ;;  %v2464_v15 = vpack.c.bf16 %v58_v12, %v55_v11  ;;  %v61_v17 = vld [vmem:[#allocation5 + $0x60] sm:$0xff]  ;;  %v68_v19 = vld [vmem:[#allocation5 + $0x98] sm:$0xff]  ;;  %p2377_p2 = scmp.ne.s32.totalorder %s1401_s6, %s2376_s7  ;;  %p2382_p4 = scmp.lt.s32.totalorder %s2376_s7, %s2376_s7 }
  0x2b   :  { %1829 = vmatpush1.bf16.msra.mxu0 %v2458_v9  ;;  %v2467_v16 = vpack.c.bf16 %v65_v14, %v62_v13  ;;  %v71_v20 = vld [vmem:[#allocation5 + $0xb0] sm:$0xff]  ;;  %v54_v22 = vld [vmem:[#allocation5 + $0x28] sm:$0xff]  ;;  %v2470_v23 = vpack.c.bf16 %v64_v18, %v61_v17  ;;  %v57_v25 = vld [vmem:[#allocation5 + $0x40] sm:$0xff]  ;;  %vm46_vm1 = vcmp.eq.s32.totalorder %v45_v6, 32 }
  0x2c   :  { %1831 = vmatprep.subr.bf16.mxu0 %v2460_v10  ;;  %v51_v21 = vld [vmem:[#allocation5 + $0x10] sm:$0xff]  ;;  %v2475_v26 = vpack.c.bf16 %v71_v20, %v68_v19  ;;  %v70_v28 = vld [vmem:[#allocation5 + $0xa8] sm:$0xff]  ;;  %v60_v29 = vld [vmem:[#allocation5 + $0x58] sm:$0xff]  ;;  %v2532_v18 = vsel %vm46_vm1, 1.0, %v2409_v1  ;;  %v2411_v20 = vmov 1.0   ;;  %p2383_p5 = por %p2382_p4, %p2381_p3 }
  0x2d   :  { %v2472_v24 = vpack.c.bf16 %v54_v22, %v51_v21  ;;  %v67_v27 = vld [vmem:[#allocation5 + $0x90] sm:$0xff]  ;;  %v74_v30 = vld [vmem:[#allocation5 + $0xc8] sm:$0xff]  ;;  %v77_v31 = vld [vmem:[#allocation5 + $0xe0] sm:$0xff]  ;;  %v2478_v32 = vpack.c.bf16 %v60_v29, %v57_v25 }
  0x2e   :  { %v63_v33 = vld [vmem:[#allocation5 + $0x70] sm:$0xff]  ;;  %v66_v34 = vld [vmem:[#allocation5 + $0x88] sm:$0xff]  ;;  %v2482_v35 = vpack.c.bf16 %v70_v28, %v67_v27  ;;  %v2485_v36 = vpack.c.bf16 %v77_v31, %v74_v30  ;;  %v73_v37 = vld [vmem:[#allocation5 + $0xc0] sm:$0xff]  ;;  %p2384_p6 = pnand %p2383_p5, %p2377_p2 }
  0x2f   :  { %1833 = vmatpush1.bf16.msra.mxu0 %v2464_v15  ;;  %1860 = vmatpush3.bf16.msra.mxu1 %v2472_v24  ;;  %v76_v38 = vld [vmem:[#allocation5 + $0xd8] sm:$0xff]  ;;  %v83_v40 = vld [vmem:[#allocation5 + $0x110] sm:$0xff]  ;;  %v2488_v41 = vpack.c.bf16 %v66_v34, %v63_v33  ;;  %v69_v42 = vld [vmem:[#allocation5 + $0xa0] sm:$0xff] }
  0x30   :  { %1835 = vmatprep.subr.bf16.mxu0 %v2467_v16  ;;  %1861 = vmatprep.subr.bf16.mxu1 %v2408_v0  ;;  %v80_v39 = vld [vmem:[#allocation5 + $0xf8] sm:$0xff]  ;;  %v2492_v44 = vpack.c.bf16 %v76_v38, %v73_v37  ;;  %v79_v46 = vld [vmem:[#allocation5 + $0xf0] sm:$0xff]  ;;  %v82_v47 = vld [vmem:[#allocation5 + $0x108] sm:$0xff] }
  0x31   :  { %v72_v43 = vld [vmem:[#allocation5 + $0xb8] sm:$0xff]  ;;  %v2495_v45 = vpack.c.bf16 %v83_v40, %v80_v39  ;;  %v86_v48 = vld [vmem:[#allocation5 + $0x128] sm:$0xff]  ;;  %v89_v49 = vld [vmem:[#allocation5 + $0x140] sm:$0xff]  ;;  %v2502_v53 = vpack.c.bf16 %v82_v47, %v79_v46 }
  0x32   :  { %v2498_v50 = vpack.c.bf16 %v72_v43, %v69_v42  ;;  %v75_v51 = vld [vmem:[#allocation5 + $0xd0] sm:$0xff]  ;;  %v78_v52 = vld [vmem:[#allocation5 + $0xe8] sm:$0xff]  ;;  %v2505_v54 = vpack.c.bf16 %v89_v49, %v86_v48  ;;  %v85_v55 = vld [vmem:[#allocation5 + $0x120] sm:$0xff] }
  0x33   :  { %1837 = vmatpush1.bf16.msra.mxu0 %v2470_v23  ;;  %1863 = vmatpush3.bf16.msra.mxu1 %v2478_v32  ;;  %v88_v56 = vld [vmem:[#allocation5 + $0x138] sm:$0xff]  ;;  %v95_v59 = vld [vmem:[#allocation5 + $0x170] sm:$0xff]  ;;  %v2508_v60 = vpack.c.bf16 %v78_v52, %v75_v51  ;;  %v81_v61 = vld [vmem:[#allocation5 + $0x100] sm:$0xff] }
  0x34   :  { %1839 = vmatprep.subr.bf16.mxu0 %v2475_v26  ;;  %1864 = vmatprep.subr.bf16.mxu1 %v2408_v0  ;;  %v92_v58 = vld [vmem:[#allocation5 + $0x158] sm:$0xff]  ;;  %v2512_v63 = vpack.c.bf16 %v88_v56, %v85_v55  ;;  %v91_v3 = vld [vmem:[#allocation5 + $0x150] sm:$0xff]  ;;  %v94_v4 = vld [vmem:[#allocation5 + $0x168] sm:$0xff] }
  0x35   :  { %v84_v62 = vld [vmem:[#allocation5 + $0x118] sm:$0xff]  ;;  %v2515_v2 = vpack.c.bf16 %v95_v59, %v92_v58  ;;  %v87_v8 = vld [vmem:[#allocation5 + $0x130] sm:$0xff]  ;;  %v90_v11 = vld [vmem:[#allocation5 + $0x148] sm:$0xff]  ;;  %v2522_v12 = vpack.c.bf16 %v94_v4, %v91_v3 }
  0x36   :  { %v2518_v7 = vpack.c.bf16 %v84_v62, %v81_v61  ;;  %v2526_v13 = vpack.c.bf16 %v90_v11, %v87_v8  ;;  %v93_v14 = vld [vmem:[#allocation5 + $0x160] sm:$0xff]  ;;  %v96_v17 = vld [vmem:[#allocation5 + $0x178] sm:$0xff]  ;;  %v99_v27 = vld [vmem:[#allocation2 + $0x8] sm:$0xff] }
  0x37   :  { %1841 = vmatpush1.bf16.msra.mxu0 %v2482_v35  ;;  %1866 = vmatpush3.bf16.msra.mxu1 %v2488_v41  ;;  %v2536_v19 = vpack.c.bf16 %v96_v17, %v93_v14  ;;  %v98_v21 = vld [vmem:[#allocation2] sm:$0xff]  ;;  %v100_v40 = vld [vmem:[#allocation2 + $0x10] sm:$0xff]  ;;  %v260_v57 = vld [vmem:[#allocation2 + $0x18] sm:$0xff] }
  0x38   :  { %1843 = vmatprep.subr.bf16.mxu0 %v2485_v36  ;;  %1867 = vmatprep.subr.bf16.mxu1 %v2408_v0  ;;  %v261_v62 = vld [vmem:[#allocation2 + $0x20] sm:$0xff] }
  0x3b   :  { %1845 = vmatpush1.bf16.msra.mxu0 %v2492_v44  ;;  %1869 = vmatpush3.bf16.msra.mxu1 %v2498_v50 }
  0x3c   :  { %1847 = vmatprep.subr.bf16.mxu0 %v2495_v45  ;;  %1870 = vmatprep.subr.bf16.mxu1 %v2408_v0 }
  0x3f   :  { %1849 = vmatpush1.bf16.msra.mxu0 %v2502_v53  ;;  %1872 = vmatpush3.bf16.msra.mxu1 %v2508_v60 }
  0x40   :  { %1851 = vmatprep.subr.bf16.mxu0 %v2505_v54  ;;  %1873 = vmatprep.subr.bf16.mxu1 %v2408_v0 }
  0x43   :  { %1853 = vmatpush1.bf16.msra.mxu0 %v2512_v63  ;;  %1875 = vmatpush3.bf16.msra.mxu1 %v2518_v7 }
  0x44   :  { %1855 = vmatprep.subr.bf16.mxu0 %v2515_v2  ;;  %1876 = vmatprep.subr.bf16.mxu1 %v2408_v0 }
  0x47   :  { %1857 = vmatpush1.bf16.msra.mxu0 %v2522_v12  ;;  %1878 = vmatpush3.bf16.msra.mxu1 %v2526_v13 }
  0x48   :  { %1883 = vmatprep.subr.bf16.mxu0 %v2456_v5  ;;  %1879 = vmatprep.subr.bf16.mxu1 %v2408_v0 }
  0x4a   :  { %2330 = vmatmul.mubr.msk.f32.vlgmr.msra.gmra.mrb[0].mxu0 %vm46_vm1, %v2411_v20 }
  0x4b   :  { %1885 = vmatpush1.bf16.msra.mxu0 %v2458_v9  ;;  %327 = vmatprep.mubr.f32.mxu0 %v2409_v1 }
  0x4c   :  { %1887 = vmatprep.subr.bf16.mxu0 %v2460_v10  ;;  %1881 = vmatpush3.bf16.msra.mxu1 %v2536_v19 }
  0x4d   :  { %1914 = vmatprep.subr.bf16.mxu1 %v2408_v0 }
  0x4f   :  { %1889 = vmatpush1.bf16.msra.mxu0 %v2464_v15  ;;  %2331 = vmatmul.mubr.msk.f32.vlgmr.msra.gmra.mrb[0].mxu1 %vm46_vm1, %v2411_v20  ;;  %v262_v20 = vld [vmem:[#allocation2 + $0x28] sm:$0xff] }
  0x50   :  { %1891 = vmatprep.subr.bf16.mxu0 %v2467_v16  ;;  %1916 = vmatpush3.bf16.msra.mxu1 %v2472_v24 }
  0x51   :  { %1613 = vmatprep.mubr.msk.f32.mxu1 %vm2410_vm0, %v2409_v1  ;;  %1917 = vmatprep.subr.bf16.mxu1 %v2408_v0 }
  0x53   :  { %1893 = vmatpush1.bf16.msra.mxu0 %v2470_v23 }
  0x54   :  { %1895 = vmatprep.subr.bf16.mxu0 %v2475_v26  ;;  %1919 = vmatpush3.bf16.msra.mxu1 %v2478_v32 }
  0x55   :  { %1920 = vmatprep.subr.bf16.mxu1 %v2408_v0 }
  0x57   :  { %1897 = vmatpush1.bf16.msra.mxu0 %v2482_v35 }
  0x58   :  { %1899 = vmatprep.subr.bf16.mxu0 %v2485_v36  ;;  %1922 = vmatpush3.bf16.msra.mxu1 %v2488_v41 }
  0x59   :  { %1923 = vmatprep.subr.bf16.mxu1 %v2408_v0 }
  0x5b   :  { %1901 = vmatpush1.bf16.msra.mxu0 %v2492_v44 }
  0x5c   :  { %1903 = vmatprep.subr.bf16.mxu0 %v2495_v45  ;;  %1925 = vmatpush3.bf16.msra.mxu1 %v2498_v50 }
  0x5d   :  { %1926 = vmatprep.subr.bf16.mxu1 %v2408_v0 }
  0x5f   :  { %1905 = vmatpush1.bf16.msra.mxu0 %v2502_v53 }
  0x60   :  { %1907 = vmatprep.subr.bf16.mxu0 %v2505_v54  ;;  %1928 = vmatpush3.bf16.msra.mxu1 %v2508_v60 }
  0x61   :  { %1929 = vmatprep.subr.bf16.mxu1 %v2408_v0 }
  0x63   :  { %1909 = vmatpush1.bf16.msra.mxu0 %v2512_v63 }
  0x64   :  { %1911 = vmatprep.subr.bf16.mxu0 %v2515_v2  ;;  %1931 = vmatpush3.bf16.msra.mxu1 %v2518_v7 }
  0x65   :  { %1932 = vmatprep.subr.bf16.mxu1 %v2408_v0 }
  0x67   :  { %1913 = vmatpush1.bf16.msra.mxu0 %v2522_v12 }
  0x68   :  { %1939 = vmatprep.subr.bf16.mxu0 %v2456_v5  ;;  %1934 = vmatpush3.bf16.msra.mxu1 %v2526_v13 }
  0x69   :  { %1935 = vmatprep.subr.bf16.mxu1 %v2408_v0 }
  0x6c   :  { %1937 = vmatpush3.bf16.msra.mxu1 %v2536_v19 }
  0x6d   :  { %1970 = vmatprep.subr.bf16.mxu1 %v2408_v0 }
 0x11d   :  { %v167_v22 = vpop.f32.mrb[0].mxu0 }
 0x11e   :  { %v242_v25 = vadd.f32 %v167_v22, %v98_v21  ;;  %v169_v28 = vpop.f32.mrb[1].mxu0 }
 0x11f   :  { %v247_v30 = vadd.f32 %v169_v28, %v99_v27 }
 0x120   :  { %v243_v29 = vmul.f32 0.5, %v242_v25 }
 0x121   :  { %v248_v34 = vmul.f32 0.5, %v247_v30 }
 0x122   :  { %2282 = vtanh.f32 %v243_v29  ;;  %v238_v31 = vpop.f32.mrb[0].mxu1 }
 0x123   :  { %v1580_v33 = vpop.f32.mrb[1].mxu1  ;;  %2284 = vtanh.f32 %v248_v34 }
 0x12c   :  { %v2283_v37 = vpop.eup %2282 }
 0x12d   :  { %v245_v38 = vmul.f32 0.5, %v2283_v37  ;;  %v2285_v43 = vpop.eup %2284  ;;  %v422_v37 = vld [vmem:[#allocation2 + $0x30] sm:$0xff] }
 0x12e   :  { %v250_v47 = vmul.f32 0.5, %v2285_v43 }
 0x12f   :  { %v246_v39 = vadd.f32 0.5, %v245_v38 }
 0x130   :  { %v251_v48 = vadd.f32 0.5, %v250_v47 }
 0x131   :  { %v252_v42 = vmul.f32 %v246_v39, %v238_v31 }
 0x132   :  { %v255_v49 = vsub.f32 1.0, %v251_v48  ;;  %v257_v52 = vmul.f32 %v251_v48, %v2532_v18 }
 0x133   :  { %v253_v46 = vadd.f32 %v252_v42, %v100_v40  ;;  %v423_v42 = vld [vmem:[#allocation2 + $0x38] sm:$0xff] }
 0x135   :  { %2286 = vtanh.f32 %v253_v46 }
 0x13f   :  { %v2287_v51 = vpop.eup %2286 }
 0x140   :  { %v256_v55 = vmul.f32 %v2287_v51, %v255_v49 }
 0x142   :  { %v258_v56 = vadd.f32 %v257_v52, %v256_v55 }
 0x144   :  { %328 = vmatmul.mubr.f32.vlgmr.msra.gmra.mrb[2].mxu0 %v258_v56  ;;  %1614 = vmatmul.mubr.f32.vlgmr.msra.gmra.mrb[2].mxu1 %v258_v56 }
 0x145   :  { %1941 = vmatpush1.bf16.msra.mxu0 %v2458_v9  ;;  %1972 = vmatpush3.bf16.msra.mxu1 %v2472_v24 }
 0x146   :  { %1943 = vmatprep.subr.bf16.mxu0 %v2460_v10  ;;  %1973 = vmatprep.subr.bf16.mxu1 %v2408_v0 }
 0x147   :  { %489 = vmatprep.mubr.f32.mxu0 %v2409_v1  ;;  %1648 = vmatprep.mubr.msk.f32.mxu1 %vm2410_vm0, %v2409_v1 }
 0x149   :  { %1945 = vmatpush1.bf16.msra.mxu0 %v2464_v15  ;;  %1975 = vmatpush3.bf16.msra.mxu1 %v2478_v32 }
 0x14a   :  { %1947 = vmatprep.subr.bf16.mxu0 %v2467_v16  ;;  %1976 = vmatprep.subr.bf16.mxu1 %v2408_v0 }
 0x14d   :  { %1949 = vmatpush1.bf16.msra.mxu0 %v2470_v23  ;;  %1978 = vmatpush3.bf16.msra.mxu1 %v2488_v41 }
 0x14e   :  { %1951 = vmatprep.subr.bf16.mxu0 %v2475_v26  ;;  %1979 = vmatprep.subr.bf16.mxu1 %v2408_v0 }
 0x151   :  { %1953 = vmatpush1.bf16.msra.mxu0 %v2482_v35  ;;  %1981 = vmatpush3.bf16.msra.mxu1 %v2498_v50 }
 0x152   :  { %1955 = vmatprep.subr.bf16.mxu0 %v2485_v36  ;;  %1982 = vmatprep.subr.bf16.mxu1 %v2408_v0 }
 0x155   :  { %1957 = vmatpush1.bf16.msra.mxu0 %v2492_v44  ;;  %1984 = vmatpush3.bf16.msra.mxu1 %v2508_v60 }
 0x156   :  { %1959 = vmatprep.subr.bf16.mxu0 %v2495_v45  ;;  %1985 = vmatprep.subr.bf16.mxu1 %v2408_v0 }
 0x159   :  { %1961 = vmatpush1.bf16.msra.mxu0 %v2502_v53  ;;  %1987 = vmatpush3.bf16.msra.mxu1 %v2518_v7 }
 0x15a   :  { %1963 = vmatprep.subr.bf16.mxu0 %v2505_v54  ;;  %1988 = vmatprep.subr.bf16.mxu1 %v2408_v0 }
 0x15d   :  { %1965 = vmatpush1.bf16.msra.mxu0 %v2512_v63  ;;  %1990 = vmatpush3.bf16.msra.mxu1 %v2526_v13 }
 0x15e   :  { %1967 = vmatprep.subr.bf16.mxu0 %v2515_v2  ;;  %1991 = vmatprep.subr.bf16.mxu1 %v2408_v0 }
 0x161   :  { %1969 = vmatpush1.bf16.msra.mxu0 %v2522_v12  ;;  %1993 = vmatpush3.bf16.msra.mxu1 %v2536_v19 }
 0x162   :  { %1995 = vmatprep.subr.bf16.mxu0 %v2456_v5  ;;  %2026 = vmatprep.subr.bf16.mxu1 %v2408_v0 }
 0x217   :  { %v329_v58 = vpop.f32.mrb[2].mxu0  ;;  %v400_v59 = vpop.f32.mrb[2].mxu1 }
 0x218   :  { %v404_v61 = vadd.f32 %v329_v58, %v260_v57  ;;  %v331_v3 = vpop.f32.mrb[3].mxu0  ;;  %v1615_v4 = vpop.f32.mrb[3].mxu1 }
 0x219   :  { %v409_v8 = vadd.f32 %v331_v3, %v261_v62 }
 0x21a   :  { %v405_v6 = vmul.f32 0.5, %v404_v61 }
 0x21b   :  { %v410_v11 = vmul.f32 0.5, %v409_v8 }
 0x21c   :  { %2288 = vtanh.f32 %v405_v6 }
 0x21d   :  { %2290 = vtanh.f32 %v410_v11 }
 0x226   :  { %v2289_v14 = vpop.eup %2288 }
 0x227   :  { %v407_v17 = vmul.f32 0.5, %v2289_v14  ;;  %v2291_v22 = vpop.eup %2290  ;;  %v584_v14 = vld [vmem:[#allocation2 + $0x48] sm:$0xff] }
 0x228   :  { %v412_v27 = vmul.f32 0.5, %v2291_v22 }
 0x229   :  { %v408_v18 = vadd.f32 0.5, %v407_v17 }
 0x22a   :  { %v413_v28 = vadd.f32 0.5, %v412_v27 }
 0x22b   :  { %v414_v21 = vmul.f32 %v408_v18, %v400_v59 }
 0x22c   :  { %v417_v29 = vsub.f32 1.0, %v413_v28  ;;  %v419_v33 = vmul.f32 %v413_v28, %v258_v56  ;;  %v424_v56 = vld [vmem:[#allocation2 + $0x40] sm:$0xff] }
 0x22d   :  { %v415_v25 = vadd.f32 %v414_v21, %v262_v20  ;;  %v585_v21 = vld [vmem:[#allocation2 + $0x50] sm:$0xff] }
 0x22f   :  { %2292 = vtanh.f32 %v415_v25 }
 0x239   :  { %v2293_v30 = vpop.eup %2292 }
 0x23a   :  { %v418_v31 = vmul.f32 %v2293_v30, %v417_v29 }
 0x23c   :  { %v420_v34 = vadd.f32 %v419_v33, %v418_v31 }
 0x23e   :  { %490 = vmatmul.mubr.f32.vlgmr.msra.gmra.mrb[4].mxu0 %v420_v34  ;;  %1649 = vmatmul.mubr.f32.vlgmr.msra.gmra.mrb[4].mxu1 %v420_v34 }
 0x23f   :  { %1997 = vmatpush1.bf16.msra.mxu0 %v2458_v9  ;;  %2028 = vmatpush3.bf16.msra.mxu1 %v2472_v24 }
 0x240   :  { %1999 = vmatprep.subr.bf16.mxu0 %v2460_v10  ;;  %2029 = vmatprep.subr.bf16.mxu1 %v2408_v0 }
 0x241   :  { %651 = vmatprep.mubr.f32.mxu0 %v2409_v1  ;;  %1683 = vmatprep.mubr.msk.f32.mxu1 %vm2410_vm0, %v2409_v1 }
 0x243   :  { %2001 = vmatpush1.bf16.msra.mxu0 %v2464_v15  ;;  %2031 = vmatpush3.bf16.msra.mxu1 %v2478_v32 }
 0x244   :  { %2003 = vmatprep.subr.bf16.mxu0 %v2467_v16  ;;  %2032 = vmatprep.subr.bf16.mxu1 %v2408_v0 }
 0x247   :  { %2005 = vmatpush1.bf16.msra.mxu0 %v2470_v23  ;;  %2034 = vmatpush3.bf16.msra.mxu1 %v2488_v41 }
 0x248   :  { %2007 = vmatprep.subr.bf16.mxu0 %v2475_v26  ;;  %2035 = vmatprep.subr.bf16.mxu1 %v2408_v0 }
 0x24b   :  { %2009 = vmatpush1.bf16.msra.mxu0 %v2482_v35  ;;  %2037 = vmatpush3.bf16.msra.mxu1 %v2498_v50 }
 0x24c   :  { %2011 = vmatprep.subr.bf16.mxu0 %v2485_v36  ;;  %2038 = vmatprep.subr.bf16.mxu1 %v2408_v0 }
 0x24f   :  { %2013 = vmatpush1.bf16.msra.mxu0 %v2492_v44  ;;  %2040 = vmatpush3.bf16.msra.mxu1 %v2508_v60 }
 0x250   :  { %2015 = vmatprep.subr.bf16.mxu0 %v2495_v45  ;;  %2041 = vmatprep.subr.bf16.mxu1 %v2408_v0 }
 0x253   :  { %2017 = vmatpush1.bf16.msra.mxu0 %v2502_v53  ;;  %2043 = vmatpush3.bf16.msra.mxu1 %v2518_v7 }
 0x254   :  { %2019 = vmatprep.subr.bf16.mxu0 %v2505_v54  ;;  %2044 = vmatprep.subr.bf16.mxu1 %v2408_v0 }
 0x257   :  { %2021 = vmatpush1.bf16.msra.mxu0 %v2512_v63  ;;  %2046 = vmatpush3.bf16.msra.mxu1 %v2526_v13 }
 0x258   :  { %2023 = vmatprep.subr.bf16.mxu0 %v2515_v2  ;;  %2047 = vmatprep.subr.bf16.mxu1 %v2408_v0 }
 0x25b   :  { %2025 = vmatpush1.bf16.msra.mxu0 %v2522_v12  ;;  %2049 = vmatpush3.bf16.msra.mxu1 %v2536_v19 }
 0x25c   :  { %2051 = vmatprep.subr.bf16.mxu0 %v2456_v5  ;;  %2082 = vmatprep.subr.bf16.mxu1 %v2408_v0 }
 0x311   :  { %v491_v38 = vpop.f32.mrb[4].mxu0  ;;  %v562_v39 = vpop.f32.mrb[4].mxu1 }
 0x312   :  { %v566_v40 = vadd.f32 %v491_v38, %v422_v37  ;;  %v493_v43 = vpop.f32.mrb[5].mxu0  ;;  %v1650_v46 = vpop.f32.mrb[5].mxu1 }
 0x313   :  { %v571_v48 = vadd.f32 %v493_v43, %v423_v42 }
 0x314   :  { %v567_v47 = vmul.f32 0.5, %v566_v40 }
 0x315   :  { %v572_v49 = vmul.f32 0.5, %v571_v48 }
 0x316   :  { %2294 = vtanh.f32 %v567_v47 }
 0x317   :  { %2296 = vtanh.f32 %v572_v49 }
 0x320   :  { %v2295_v51 = vpop.eup %2294 }
 0x321   :  { %v569_v52 = vmul.f32 0.5, %v2295_v51  ;;  %v2297_v58 = vpop.eup %2296  ;;  %v746_v51 = vld [vmem:[#allocation2 + $0x60] sm:$0xff] }
 0x322   :  { %v574_v61 = vmul.f32 0.5, %v2297_v58 }
 0x323   :  { %v570_v55 = vadd.f32 0.5, %v569_v52 }
 0x324   :  { %v575_v62 = vadd.f32 0.5, %v574_v61 }
 0x325   :  { %v576_v57 = vmul.f32 %v570_v55, %v562_v39 }
 0x326   :  { %v579_v3 = vsub.f32 1.0, %v575_v62  ;;  %v581_v8 = vmul.f32 %v575_v62, %v420_v34  ;;  %v586_v34 = vld [vmem:[#allocation2 + $0x58] sm:$0xff] }
 0x327   :  { %v577_v59 = vadd.f32 %v576_v57, %v424_v56  ;;  %v747_v57 = vld [vmem:[#allocation2 + $0x68] sm:$0xff] }
 0x329   :  { %2298 = vtanh.f32 %v577_v59 }
 0x333   :  { %v2299_v4 = vpop.eup %2298 }
 0x334   :  { %v580_v6 = vmul.f32 %v2299_v4, %v579_v3 }
 0x336   :  { %v582_v11 = vadd.f32 %v581_v8, %v580_v6 }
 0x338   :  { %652 = vmatmul.mubr.f32.vlgmr.msra.gmra.mrb[6].mxu0 %v582_v11  ;;  %1684 = vmatmul.mubr.f32.vlgmr.msra.gmra.mrb[6].mxu1 %v582_v11 }
 0x339   :  { %2053 = vmatpush1.bf16.msra.mxu0 %v2458_v9  ;;  %2084 = vmatpush3.bf16.msra.mxu1 %v2472_v24 }
 0x33a   :  { %2055 = vmatprep.subr.bf16.mxu0 %v2460_v10  ;;  %2085 = vmatprep.subr.bf16.mxu1 %v2408_v0 }
 0x33b   :  { %813 = vmatprep.mubr.f32.mxu0 %v2409_v1  ;;  %1718 = vmatprep.mubr.msk.f32.mxu1 %vm2410_vm0, %v2409_v1 }
 0x33d   :  { %2057 = vmatpush1.bf16.msra.mxu0 %v2464_v15  ;;  %2087 = vmatpush3.bf16.msra.mxu1 %v2478_v32 }
 0x33e   :  { %2059 = vmatprep.subr.bf16.mxu0 %v2467_v16  ;;  %2088 = vmatprep.subr.bf16.mxu1 %v2408_v0 }
 0x341   :  { %2061 = vmatpush1.bf16.msra.mxu0 %v2470_v23  ;;  %2090 = vmatpush3.bf16.msra.mxu1 %v2488_v41 }
 0x342   :  { %2063 = vmatprep.subr.bf16.mxu0 %v2475_v26  ;;  %2091 = vmatprep.subr.bf16.mxu1 %v2408_v0 }
 0x345   :  { %2065 = vmatpush1.bf16.msra.mxu0 %v2482_v35  ;;  %2093 = vmatpush3.bf16.msra.mxu1 %v2498_v50 }
 0x346   :  { %2067 = vmatprep.subr.bf16.mxu0 %v2485_v36  ;;  %2094 = vmatprep.subr.bf16.mxu1 %v2408_v0 }
 0x349   :  { %2069 = vmatpush1.bf16.msra.mxu0 %v2492_v44  ;;  %2096 = vmatpush3.bf16.msra.mxu1 %v2508_v60 }
 0x34a   :  { %2071 = vmatprep.subr.bf16.mxu0 %v2495_v45  ;;  %2097 = vmatprep.subr.bf16.mxu1 %v2408_v0 }
 0x34d   :  { %2073 = vmatpush1.bf16.msra.mxu0 %v2502_v53  ;;  %2099 = vmatpush3.bf16.msra.mxu1 %v2518_v7 }
 0x34e   :  { %2075 = vmatprep.subr.bf16.mxu0 %v2505_v54  ;;  %2100 = vmatprep.subr.bf16.mxu1 %v2408_v0 }
 0x351   :  { %2077 = vmatpush1.bf16.msra.mxu0 %v2512_v63  ;;  %2102 = vmatpush3.bf16.msra.mxu1 %v2526_v13 }
 0x352   :  { %2079 = vmatprep.subr.bf16.mxu0 %v2515_v2  ;;  %2103 = vmatprep.subr.bf16.mxu1 %v2408_v0 }
 0x355   :  { %2081 = vmatpush1.bf16.msra.mxu0 %v2522_v12  ;;  %2105 = vmatpush3.bf16.msra.mxu1 %v2536_v19 }
 0x356   :  { %2107 = vmatprep.subr.bf16.mxu0 %v2456_v5  ;;  %2138 = vmatprep.subr.bf16.mxu1 %v2408_v0 }
 0x40b   :  { %v653_v17 = vpop.f32.mrb[6].mxu0  ;;  %v724_v18 = vpop.f32.mrb[6].mxu1 }
 0x40c   :  { %v728_v20 = vadd.f32 %v653_v17, %v584_v14  ;;  %v655_v22 = vpop.f32.mrb[7].mxu0  ;;  %v1685_v25 = vpop.f32.mrb[7].mxu1 }
 0x40d   :  { %v733_v28 = vadd.f32 %v655_v22, %v585_v21 }
 0x40e   :  { %v729_v27 = vmul.f32 0.5, %v728_v20 }
 0x40f   :  { %v734_v29 = vmul.f32 0.5, %v733_v28 }
 0x410   :  { %2300 = vtanh.f32 %v729_v27 }
 0x411   :  { %2302 = vtanh.f32 %v734_v29 }
 0x41a   :  { %v2301_v30 = vpop.eup %2300 }
 0x41b   :  { %v731_v31 = vmul.f32 0.5, %v2301_v30  ;;  %v2303_v38 = vpop.eup %2302  ;;  %v908_v30 = vld [vmem:[#allocation2 + $0x78] sm:$0xff] }
 0x41c   :  { %v736_v40 = vmul.f32 0.5, %v2303_v38 }
 0x41d   :  { %v732_v33 = vadd.f32 0.5, %v731_v31 }
 0x41e   :  { %v737_v42 = vadd.f32 0.5, %v736_v40 }
 0x41f   :  { %v738_v37 = vmul.f32 %v732_v33, %v724_v18 }
 0x420   :  { %v741_v43 = vsub.f32 1.0, %v737_v42  ;;  %v743_v48 = vmul.f32 %v737_v42, %v582_v11  ;;  %v748_v11 = vld [vmem:[#allocation2 + $0x70] sm:$0xff] }
 0x421   :  { %v739_v39 = vadd.f32 %v738_v37, %v586_v34  ;;  %v909_v37 = vld [vmem:[#allocation2 + $0x80] sm:$0xff] }
 0x423   :  { %2304 = vtanh.f32 %v739_v39 }
 0x42d   :  { %v2305_v46 = vpop.eup %2304 }
 0x42e   :  { %v742_v47 = vmul.f32 %v2305_v46, %v741_v43 }
 0x430   :  { %v744_v49 = vadd.f32 %v743_v48, %v742_v47 }
 0x432   :  { %814 = vmatmul.mubr.f32.vlgmr.msra.gmra.mrb[8].mxu0 %v744_v49  ;;  %1719 = vmatmul.mubr.f32.vlgmr.msra.gmra.mrb[8].mxu1 %v744_v49 }
 0x433   :  { %2109 = vmatpush1.bf16.msra.mxu0 %v2458_v9  ;;  %2140 = vmatpush3.bf16.msra.mxu1 %v2472_v24 }
 0x434   :  { %2111 = vmatprep.subr.bf16.mxu0 %v2460_v10  ;;  %2141 = vmatprep.subr.bf16.mxu1 %v2408_v0 }
 0x435   :  { %975 = vmatprep.mubr.f32.mxu0 %v2409_v1  ;;  %1753 = vmatprep.mubr.msk.f32.mxu1 %vm2410_vm0, %v2409_v1 }
 0x437   :  { %2113 = vmatpush1.bf16.msra.mxu0 %v2464_v15  ;;  %2143 = vmatpush3.bf16.msra.mxu1 %v2478_v32 }
 0x438   :  { %2115 = vmatprep.subr.bf16.mxu0 %v2467_v16  ;;  %2144 = vmatprep.subr.bf16.mxu1 %v2408_v0 }
 0x43b   :  { %2117 = vmatpush1.bf16.msra.mxu0 %v2470_v23  ;;  %2146 = vmatpush3.bf16.msra.mxu1 %v2488_v41 }
 0x43c   :  { %2119 = vmatprep.subr.bf16.mxu0 %v2475_v26  ;;  %2147 = vmatprep.subr.bf16.mxu1 %v2408_v0 }
 0x43f   :  { %2121 = vmatpush1.bf16.msra.mxu0 %v2482_v35  ;;  %2149 = vmatpush3.bf16.msra.mxu1 %v2498_v50 }
 0x440   :  { %2123 = vmatprep.subr.bf16.mxu0 %v2485_v36  ;;  %2150 = vmatprep.subr.bf16.mxu1 %v2408_v0 }
 0x443   :  { %2125 = vmatpush1.bf16.msra.mxu0 %v2492_v44  ;;  %2152 = vmatpush3.bf16.msra.mxu1 %v2508_v60 }
 0x444   :  { %2127 = vmatprep.subr.bf16.mxu0 %v2495_v45  ;;  %2153 = vmatprep.subr.bf16.mxu1 %v2408_v0 }
 0x447   :  { %2129 = vmatpush1.bf16.msra.mxu0 %v2502_v53  ;;  %2155 = vmatpush3.bf16.msra.mxu1 %v2518_v7 }
 0x448   :  { %2131 = vmatprep.subr.bf16.mxu0 %v2505_v54  ;;  %2156 = vmatprep.subr.bf16.mxu1 %v2408_v0 }
 0x44b   :  { %2133 = vmatpush1.bf16.msra.mxu0 %v2512_v63  ;;  %2158 = vmatpush3.bf16.msra.mxu1 %v2526_v13 }
 0x44c   :  { %2135 = vmatprep.subr.bf16.mxu0 %v2515_v2  ;;  %2159 = vmatprep.subr.bf16.mxu1 %v2408_v0 }
 0x44f   :  { %2137 = vmatpush1.bf16.msra.mxu0 %v2522_v12  ;;  %2161 = vmatpush3.bf16.msra.mxu1 %v2536_v19 }
 0x450   :  { %2163 = vmatprep.subr.bf16.mxu0 %v2456_v5  ;;  %2194 = vmatprep.subr.bf16.mxu1 %v2408_v0 }
 0x505   :  { %v815_v52 = vpop.f32.mrb[8].mxu0  ;;  %v886_v55 = vpop.f32.mrb[8].mxu1 }
 0x506   :  { %v890_v56 = vadd.f32 %v815_v52, %v746_v51  ;;  %v817_v58 = vpop.f32.mrb[9].mxu0  ;;  %v1720_v59 = vpop.f32.mrb[9].mxu1 }
 0x507   :  { %v895_v62 = vadd.f32 %v817_v58, %v747_v57 }
 0x508   :  { %v891_v61 = vmul.f32 0.5, %v890_v56 }
 0x509   :  { %v896_v3 = vmul.f32 0.5, %v895_v62 }
 0x50a   :  { %2306 = vtanh.f32 %v891_v61 }
 0x50b   :  { %2308 = vtanh.f32 %v896_v3 }
 0x514   :  { %v2307_v4 = vpop.eup %2306 }
 0x515   :  { %v893_v6 = vmul.f32 0.5, %v2307_v4  ;;  %v2309_v17 = vpop.eup %2308 }
 0x516   :  { %v898_v20 = vmul.f32 0.5, %v2309_v17 }
 0x517   :  { %v894_v8 = vadd.f32 0.5, %v893_v6 }
 0x518   :  { %v899_v21 = vadd.f32 0.5, %v898_v20 }
 0x519   :  { %v900_v14 = vmul.f32 %v894_v8, %v886_v55  ;;  %v1233_v8 = vld [vmem:[#allocation2 + $0xb0] sm:$0xff] }
 0x51a   :  { %v903_v22 = vsub.f32 1.0, %v899_v21  ;;  %v905_v28 = vmul.f32 %v899_v21, %v744_v49  ;;  %v910_v49 = vld [vmem:[#allocation2 + $0x88] sm:$0xff] }
 0x51b   :  { %v901_v18 = vadd.f32 %v900_v14, %v748_v11 }
 0x51d   :  { %2310 = vtanh.f32 %v901_v18 }
 0x527   :  { %v2311_v25 = vpop.eup %2310 }
 0x528   :  { %v904_v27 = vmul.f32 %v2311_v25, %v903_v22 }
 0x52a   :  { %v906_v29 = vadd.f32 %v905_v28, %v904_v27  ;;  %v1234_v27 = vld [vmem:[#allocation2 + $0xb8] sm:$0xff] }
 0x52c   :  { %976 = vmatmul.mubr.f32.vlgmr.msra.gmra.mrb[10].mxu0 %v906_v29  ;;  %1754 = vmatmul.mubr.f32.vlgmr.msra.gmra.mrb[10].mxu1 %v906_v29 }
 0x52d   :  { %2165 = vmatpush1.bf16.msra.mxu0 %v2458_v9  ;;  %2196 = vmatpush3.bf16.msra.mxu1 %v2472_v24 }
 0x52e   :  { %2167 = vmatprep.subr.bf16.mxu0 %v2460_v10  ;;  %2197 = vmatprep.subr.bf16.mxu1 %v2408_v0 }
 0x52f   :  { %1137 = vmatprep.mubr.f32.mxu0 %v2409_v1  ;;  %1788 = vmatprep.mubr.msk.f32.mxu1 %vm2410_vm0, %v2409_v1 }
 0x531   :  { %2169 = vmatpush1.bf16.msra.mxu0 %v2464_v15  ;;  %2199 = vmatpush3.bf16.msra.mxu1 %v2478_v32 }
 0x532   :  { %2171 = vmatprep.subr.bf16.mxu0 %v2467_v16  ;;  %2200 = vmatprep.subr.bf16.mxu1 %v2408_v0 }
 0x535   :  { %2173 = vmatpush1.bf16.msra.mxu0 %v2470_v23  ;;  %2202 = vmatpush3.bf16.msra.mxu1 %v2488_v41 }
 0x536   :  { %2175 = vmatprep.subr.bf16.mxu0 %v2475_v26  ;;  %2203 = vmatprep.subr.bf16.mxu1 %v2408_v0 }
 0x539   :  { %2177 = vmatpush1.bf16.msra.mxu0 %v2482_v35  ;;  %2205 = vmatpush3.bf16.msra.mxu1 %v2498_v50 }
 0x53a   :  { %2179 = vmatprep.subr.bf16.mxu0 %v2485_v36  ;;  %2206 = vmatprep.subr.bf16.mxu1 %v2408_v0 }
 0x53d   :  { %2181 = vmatpush1.bf16.msra.mxu0 %v2492_v44  ;;  %2208 = vmatpush3.bf16.msra.mxu1 %v2508_v60 }
 0x53e   :  { %2183 = vmatprep.subr.bf16.mxu0 %v2495_v45  ;;  %2209 = vmatprep.subr.bf16.mxu1 %v2408_v0 }
 0x541   :  { %2185 = vmatpush1.bf16.msra.mxu0 %v2502_v53  ;;  %2211 = vmatpush3.bf16.msra.mxu1 %v2518_v7 }
 0x542   :  { %2187 = vmatprep.subr.bf16.mxu0 %v2505_v54  ;;  %2212 = vmatprep.subr.bf16.mxu1 %v2408_v0 }
 0x545   :  { %2189 = vmatpush1.bf16.msra.mxu0 %v2512_v63  ;;  %2214 = vmatpush3.bf16.msra.mxu1 %v2526_v13 }
 0x546   :  { %2191 = vmatprep.subr.bf16.mxu0 %v2515_v2  ;;  %2215 = vmatprep.subr.bf16.mxu1 %v2408_v0 }
 0x549   :  { %2193 = vmatpush1.bf16.msra.mxu0 %v2522_v12  ;;  %2217 = vmatpush3.bf16.msra.mxu1 %v2536_v19 }
 0x54a   :  { %2219 = vmatprep.subr.bf16.mxu0 %v2456_v5  ;;  %2250 = vmatprep.subr.bf16.mxu1 %v2408_v0 }
 0x5ff   :  { %v977_v31 = vpop.f32.mrb[10].mxu0  ;;  %v1048_v33 = vpop.f32.mrb[10].mxu1 }
 0x600   :  { %v1052_v34 = vadd.f32 %v977_v31, %v908_v30  ;;  %v979_v38 = vpop.f32.mrb[11].mxu0  ;;  %v1755_v39 = vpop.f32.mrb[11].mxu1 }
 0x601   :  { %v1057_v42 = vadd.f32 %v979_v38, %v909_v37 }
 0x602   :  { %v1053_v40 = vmul.f32 0.5, %v1052_v34 }
 0x603   :  { %v1058_v43 = vmul.f32 0.5, %v1057_v42 }
 0x604   :  { %2312 = vtanh.f32 %v1053_v40 }
 0x605   :  { %2314 = vtanh.f32 %v1058_v43 }
 0x60e   :  { %v2313_v46 = vpop.eup %2312 }
 0x60f   :  { %v1055_v47 = vmul.f32 0.5, %v2313_v46  ;;  %v2315_v5 = vpop.eup %2314 }
 0x610   :  { %v1060_v55 = vmul.f32 0.5, %v2315_v5 }
 0x611   :  { %v1056_v48 = vadd.f32 0.5, %v1055_v47 }
 0x612   :  { %v1061_v56 = vadd.f32 0.5, %v1060_v55 }
 0x613   :  { %v1062_v51 = vmul.f32 %v1056_v48, %v1048_v33 }
 0x614   :  { %v1065_v57 = vsub.f32 1.0, %v1061_v56  ;;  %v1067_v61 = vmul.f32 %v1061_v56, %v906_v29 }
 0x615   :  { %v1063_v52 = vadd.f32 %v1062_v51, %v910_v49 }
 0x617   :  { %2316 = vtanh.f32 %v1063_v52 }
 0x621   :  { %v2317_v58 = vpop.eup %2316 }
 0x622   :  { %v1066_v59 = vmul.f32 %v2317_v58, %v1065_v57 }
 0x624   :  { %v1068_v62 = vadd.f32 %v1067_v61, %v1066_v59 }
 0x626   :  { %1138 = vmatmul.mubr.f32.vlgmr.msra.gmra.mrb[12].mxu0 %v1068_v62  ;;  %1789 = vmatmul.mubr.f32.vlgmr.msra.gmra.mrb[12].mxu1 %v1068_v62 }
 0x627   :  { %2221 = vmatpush1.bf16.msra.mxu0 %v2458_v9  ;;  %2252 = vmatpush3.bf16.msra.mxu1 %v2472_v24 }
 0x628   :  { %2223 = vmatprep.subr.bf16.mxu0 %v2460_v10  ;;  %2253 = vmatprep.subr.bf16.mxu1 %v2408_v0 }
 0x629   :  { %1299 = vmatprep.mubr.f32.mxu0 %v2409_v1  ;;  %1823 = vmatprep.mubr.msk.f32.mxu1 %vm2410_vm0, %v2409_v1  ;;  %v1070_v1 = vld [vmem:[#allocation2 + $0x90] sm:$0xff] }
 0x62b   :  { %2225 = vmatpush1.bf16.msra.mxu0 %v2464_v15  ;;  %2255 = vmatpush3.bf16.msra.mxu1 %v2478_v32 }
 0x62c   :  { %2227 = vmatprep.subr.bf16.mxu0 %v2467_v16  ;;  %2256 = vmatprep.subr.bf16.mxu1 %v2408_v0  ;;  %v1071_v16 = vld [vmem:[#allocation2 + $0x98] sm:$0xff] }
 0x62f   :  { %2229 = vmatpush1.bf16.msra.mxu0 %v2470_v23  ;;  %2258 = vmatpush3.bf16.msra.mxu1 %v2488_v41 }
 0x630   :  { %2231 = vmatprep.subr.bf16.mxu0 %v2475_v26  ;;  %2259 = vmatprep.subr.bf16.mxu1 %v2408_v0 }
 0x633   :  { %2233 = vmatpush1.bf16.msra.mxu0 %v2482_v35  ;;  %2261 = vmatpush3.bf16.msra.mxu1 %v2498_v50 }
 0x634   :  { %2235 = vmatprep.subr.bf16.mxu0 %v2485_v36  ;;  %2262 = vmatprep.subr.bf16.mxu1 %v2408_v0 }
 0x637   :  { %2237 = vmatpush1.bf16.msra.mxu0 %v2492_v44  ;;  %2264 = vmatpush3.bf16.msra.mxu1 %v2508_v60 }
 0x638   :  { %2239 = vmatprep.subr.bf16.mxu0 %v2495_v45  ;;  %2265 = vmatprep.subr.bf16.mxu1 %v2408_v0 }
 0x63b   :  { %2241 = vmatpush1.bf16.msra.mxu0 %v2502_v53  ;;  %2267 = vmatpush3.bf16.msra.mxu1 %v2518_v7 }
 0x63c   :  { %2243 = vmatprep.subr.bf16.mxu0 %v2505_v54  ;;  %2268 = vmatprep.subr.bf16.mxu1 %v2408_v0 }
 0x63f   :  { %2245 = vmatpush1.bf16.msra.mxu0 %v2512_v63  ;;  %2270 = vmatpush3.bf16.msra.mxu1 %v2526_v13 }
 0x640   :  { %2247 = vmatprep.subr.bf16.mxu0 %v2515_v2  ;;  %2271 = vmatprep.subr.bf16.mxu1 %v2408_v0  ;;  %v1072_v0 = vld [vmem:[#allocation2 + $0xa0] sm:$0xff] }
 0x643   :  { %2249 = vmatpush1.bf16.msra.mxu0 %v2522_v12  ;;  %2273 = vmatpush3.bf16.msra.mxu1 %v2536_v19  ;;  %v1232_v19 = vld [vmem:[#allocation2 + $0xa8] sm:$0xff] }
 0x6f9   :  { %v1139_v9 = vpop.f32.mrb[12].mxu0  ;;  %v1210_v10 = vpop.f32.mrb[12].mxu1 }
 0x6fa   :  { %v1214_v15 = vadd.f32 %v1139_v9, %v1070_v1  ;;  %v1141_v23 = vpop.f32.mrb[13].mxu0  ;;  %v1790_v24 = vpop.f32.mrb[13].mxu1 }
 0x6fb   :  { %v1219_v32 = vadd.f32 %v1141_v23, %v1071_v16 }
 0x6fc   :  { %v1215_v26 = vmul.f32 0.5, %v1214_v15 }
 0x6fd   :  { %v1220_v35 = vmul.f32 0.5, %v1219_v32 }
 0x6fe   :  { %2318 = vtanh.f32 %v1215_v26 }
 0x6ff   :  { %2320 = vtanh.f32 %v1220_v35 }
 0x708   :  { %v2319_v36 = vpop.eup %2318 }
 0x709   :  { %v1217_v41 = vmul.f32 0.5, %v2319_v36  ;;  %v2321_v50 = vpop.eup %2320 }
 0x70a   :  { %v1222_v54 = vmul.f32 0.5, %v2321_v50 }
 0x70b   :  { %v1218_v44 = vadd.f32 0.5, %v1217_v41 }
 0x70c   :  { %v1223_v60 = vadd.f32 0.5, %v1222_v54 }
 0x70d   :  { %v1224_v45 = vmul.f32 %v1218_v44, %v1210_v10 }
 0x70e   :  { %v1227_v63 = vsub.f32 1.0, %v1223_v60  ;;  %v1229_v12 = vmul.f32 %v1223_v60, %v1068_v62 }
 0x70f   :  { %v1225_v53 = vadd.f32 %v1224_v45, %v1072_v0 }
 0x711   :  { %2322 = vtanh.f32 %v1225_v53 }
 0x71b   :  { %v2323_v2 = vpop.eup %2322 }
 0x71c   :  { %v1228_v7 = vmul.f32 %v2323_v2, %v1227_v63 }
 0x71e   :  { %v1230_v13 = vadd.f32 %v1229_v12, %v1228_v7 }
 0x720   :  { %1300 = vmatmul.mubr.f32.vlgmr.msra.gmra.mrb[14].mxu0 %v1230_v13  ;;  %1824 = vmatmul.mubr.f32.vlgmr.msra.gmra.mrb[14].mxu1 %v1230_v13 }
 0x7f3   :  { %v1301_v3 = vpop.f32.mrb[14].mxu0  ;;  %v1372_v4 = vpop.f32.mrb[14].mxu1 }
 0x7f4   :  { %v1376_v6 = vadd.f32 %v1301_v3, %v1232_v19  ;;  %v1303_v11 = vpop.f32.mrb[15].mxu0  ;;  %v1825_v14 = vpop.f32.mrb[15].mxu1 }
 0x7f5   :  { %v1381_v18 = vadd.f32 %v1303_v11, %v1233_v8 }
 0x7f6   :  { %v1377_v17 = vmul.f32 0.5, %v1376_v6 }
 0x7f7   :  { %v1382_v20 = vmul.f32 0.5, %v1381_v18 }
 0x7f8   :  { %2324 = vtanh.f32 %v1377_v17 }
 0x7f9   :  { %2326 = vtanh.f32 %v1382_v20 }
 0x802   :  { %v2325_v21 = vpop.eup %2324 }
 0x803   :  { %v1379_v22 = vmul.f32 0.5, %v2325_v21  ;;  %v2327_v29 = vpop.eup %2326 }
 0x804   :  { %v1384_v31 = vmul.f32 0.5, %v2327_v29 }
 0x805   :  { %v1380_v25 = vadd.f32 0.5, %v1379_v22 }
 0x806   :  { %v1385_v33 = vadd.f32 0.5, %v1384_v31 }
 0x807   :  { %v1386_v28 = vmul.f32 %v1380_v25, %v1372_v4 }
 0x808   :  { %v1389_v34 = vsub.f32 1.0, %v1385_v33  ;;  %v1391_v39 = vmul.f32 %v1385_v33, %v1230_v13 }
 0x809   :  { %v1387_v30 = vadd.f32 %v1386_v28, %v1234_v27 }
 0x80b   :  { %2328 = vtanh.f32 %v1387_v30 }
 0x815   :  { %v2329_v37 = vpop.eup %2328 }
 0x816   :  { %v1390_v38 = vmul.f32 %v2329_v37, %v1389_v34 }
 0x818   :  { %v1392_v40 = vadd.f32 %v1391_v39, %v1390_v38 }
 0x81a   :  { %1393 = vst [vmem:[#allocation7] sm:$0xff] %v1392_v40 }
 0x81b   :  { %2387 = shalt.err (!%p2384_p6)
}
 0x81c   :  { %s2388_s10 = scalar_lea.hbm %s2801_s2, 128 }
 0x81d   :  { %p2389_p7 = scmp.ne.s32.totalorder %s2801_s2, %s2388_s10  ;;  %p2392_p8 = scmp.lt.u32.totalorder %s2388_s10, %s2801_s2 }
 0x81f   :  { %p2394_p9 = pnand %p2392_p8, %p2389_p7 }
 0x821   :  { %2397 = shalt.err (!%p2394_p9)
}
 0x822   :  { %1403 = dma.vmem_to_hbm [thread:$0]  %s1401_s6, 128, %s2801_s2, [#allocation4]  }
 0x823   :  { %2402 = dma.done.wait [#allocation4], 128  }
 0x824   :  { %2403 = vsyncadd [#allocation4], 4294967168 }
 0x825   :  { %1407 = vsyncpa [#allocation3], 1 }
 0x826   :  { %1408 = vsyncpa [#allocation6], 1 }
 0x827   :  { %1409 = vsyncpa [#allocation4], 1 }

</bundles_post_ra>
